<compile_context>
chip_gen: v5e
topology: v5e:2x2
jax: 0.10.0
libtpu: 0.0.40
codegen_flags: <defaults>
</compile_context>

<pallas_src>
import functools

import jax
import jax.numpy as jnp
import numpy as np
from jax.experimental import pallas as pl
from jax.experimental.pallas import tpu as pltpu

_LANES = 128


def _round_up(v, m):
    return (v + m - 1) // m * m


def _fold_bn(gamma, beta, mean, var, eps=1e-5):
    scale = gamma / jnp.sqrt(var + eps)
    bias = beta - mean * scale
    return (scale.reshape(1, -1).astype(jnp.float32),
            bias.reshape(1, -1).astype(jnp.float32))


def _bottleneck_kernel(H, W, PAD, x_ref, w1_ref, b1_ref, w2_ref, b2_ref, w3_ref, b3_ref,
                       out_ref, pad_ref, col_ref):
    """One image per grid step:
       conv1x1+bn1+relu -> conv3x3(+bn2, im2col)+relu -> conv1x1(+bn3) -> +identity -> relu."""
    HW = H * W
    WP = w1_ref.shape[1]          # padded `width`

    # ---- conv1 (1x1; BN1 scale folded into w1) + bias + relu ----------------------
    h1 = jnp.dot(x_ref[...], w1_ref[...], preferred_element_type=jnp.float32)
    out1 = jnp.maximum(h1 + b1_ref[...], 0.0)                           # (HW, WP) f32

    # ---- conv2 (3x3, stride=1, pad=1) via halo-padded bf16 scratch + im2col -------
    # pad_ref rows: [0, PAD) zeros | [PAD, PAD + HW) image | [PAD + HW, PAD + HW + PAD) zeros
    # Only the two halo slabs are zeroed (body rows fully overwritten every step).
    halo = jnp.zeros((PAD, WP), jnp.bfloat16)
    pad_ref[pl.ds(0, PAD), :] = halo
    pad_ref[pl.ds(PAD + HW, PAD), :] = halo
    pad_ref[pl.ds(PAD, HW), :] = out1.astype(jnp.bfloat16)

    # Column-edge validity masks, kept as (HW, 1) — jnp.where broadcasts across lanes.
    w_idx = jax.lax.broadcasted_iota(jnp.int32, (HW, 1), 0) % W
    mask_l = w_idx > 0          # dx = -1 valid
    mask_r = w_idx < W - 1      # dx = +1 valid

    for ky in range(3):
        for kx in range(3):
            t = 3 * ky + kx
            start = PAD + (ky - 1) * W + (kx - 1)        # static offset into pad_ref
            patch = pad_ref[pl.ds(start, HW), :]         # bf16 VMEM load (no roll/XLU)
            if kx == 0:
                patch = jnp.where(mask_l, patch, 0.0)
            elif kx == 2:
                patch = jnp.where(mask_r, patch, 0.0)
            col_ref[:, t * WP:(t + 1) * WP] = patch

    # One deep MXU matmul (K = 9 * WP); BN2 scale already folded into w2.
    h2 = jnp.dot(col_ref[...], w2_ref[...], preferred_element_type=jnp.float32)
    out2 = jnp.maximum(h2 + b2_ref[...], 0.0)                           # (HW, WP) f32

    # ---- conv3 (1x1) + [ScConv == identity, see TODO] + BN3 bias ------------------
    h3 = jnp.dot(out2.astype(jnp.bfloat16), w3_ref[...],
                 preferred_element_type=jnp.float32)
    out3 = h3 + b3_ref[...]                                             # (HW, OP) f32

    # ---- residual add (downsample=None -> identity = x) + relu --------------------
    out_ref[...] = jnp.maximum(out3 + x_ref[...].astype(jnp.float32), 0.0)


def scconv_bottleneck_forward(x_nchw, params):
    """Runs the fused Pallas kernel.  x_nchw: (N, Cin, H, W) float32."""
    N, Cin, H, W = x_nchw.shape
    width = params['w1'].shape[0]
    cout = params['w3'].shape[0]
    assert cout == Cin, "downsample is None => inplanes must equal planes*expansion"
    HW = H * W
    assert HW % 8 == 0, "per-image row tile must be a multiple of 8 sublanes"

    CP = _round_up(Cin, _LANES)
    WP = _round_up(width, _LANES)
    OP = _round_up(cout, _LANES)
    PAD = _round_up(W + 1, 16)          # sublane-pack aligned halo (bf16 packs 16 rows)
    PADROWS = HW + 2 * PAD

    # NCHW -> NHWC -> (N*H*W, Cin), zero-pad channels to full 128-lane width, bf16 I/O.
    x2 = jnp.transpose(x_nchw, (0, 2, 3, 1)).reshape(N * HW, Cin)
    x2 = jnp.pad(x2, ((0, 0), (0, CP - Cin))).astype(jnp.bfloat16)

    # Fold BN scales into the conv weights (per output channel); keep only the biases.
    s1, b1 = _fold_bn(params['bn1_gamma'], params['bn1_beta'], params['bn1_mean'], params['bn1_var'])
    s2, b2 = _fold_bn(params['bn2_gamma'], params['bn2_beta'], params['bn2_mean'], params['bn2_var'])
    s3, b3 = _fold_bn(params['bn3_gamma'], params['bn3_beta'], params['bn3_mean'], params['bn3_var'])

    # torch conv weights are OIHW; re-layout for right-multiplication matmuls & pad lanes.
    w1s = params['w1'][:, :, 0, 0].T * s1                                   # (Cin, width)
    w1p = jnp.zeros((CP, WP), jnp.float32).at[:Cin, :width].set(w1s)

    w2s = jnp.transpose(params['w2'], (2, 3, 1, 0)).reshape(9, width, width) * s2
    w2p = jnp.zeros((9, WP, WP), jnp.float32).at[:, :width, :width].set(w2s)
    w2p = w2p.reshape(9 * WP, WP)                                           # im2col layout

    w3s = params['w3'][:, :, 0, 0].T * s3                                   # (width, cout)
    w3p = jnp.zeros((WP, OP), jnp.float32).at[:width, :cout].set(w3s)

    b1p = jnp.zeros((1, WP), jnp.float32).at[:, :width].set(b1)
    b2p = jnp.zeros((1, WP), jnp.float32).at[:, :width].set(b2)
    b3p = jnp.zeros((1, OP), jnp.float32).at[:, :cout].set(b3)

    # bf16 MXU operands (f32 accumulation inside the kernel).
    w1b = w1p.astype(jnp.bfloat16)
    w2b = w2p.astype(jnp.bfloat16)
    w3b = w3p.astype(jnp.bfloat16)

    kernel = functools.partial(_bottleneck_kernel, H, W, PAD)

    flops = 2 * N * HW * (CP * WP + 9 * WP * WP + WP * OP)
    bytes_accessed = (x2.size * 2 + N * HW * OP * 4
                      + (w1b.size + w2b.size + w3b.size) * 2
                      + (b1p.size + b2p.size + b3p.size) * 4)

    out2d = pl.pallas_call(
        kernel,
        out_shape=jax.ShapeDtypeStruct((N * HW, OP), jnp.float32),
        grid=(N,),
        in_specs=[
            pl.BlockSpec((HW, CP), lambda i: (i, 0)),          # x: one image per step (bf16)
            pl.BlockSpec((CP, WP), lambda i: (0, 0)),          # w1 (BN1 folded, bf16)
            pl.BlockSpec((1, WP), lambda i: (0, 0)),           # b1
            pl.BlockSpec((9 * WP, WP), lambda i: (0, 0)),      # w2 (im2col layout, bf16)
            pl.BlockSpec((1, WP), lambda i: (0, 0)),           # b2
            pl.BlockSpec((WP, OP), lambda i: (0, 0)),          # w3 (BN3 folded, bf16)
            pl.BlockSpec((1, OP), lambda i: (0, 0)),           # b3
        ],
        out_specs=pl.BlockSpec((HW, OP), lambda i: (i, 0)),    # lane-dense output tile
        scratch_shapes=[
            pltpu.VMEM((PADROWS, WP), jnp.bfloat16),           # halo-padded out1 (bf16)
            pltpu.VMEM((HW, 9 * WP), jnp.bfloat16),            # im2col patch matrix
        ],
        compiler_params=pltpu.CompilerParams(
            dimension_semantics=("parallel",),                 # megacore-split the batch
            vmem_limit_bytes=64 * 1024 * 1024,
        ),
        cost_estimate=pl.CostEstimate(flops=flops, transcendentals=0,
                                      bytes_accessed=bytes_accessed),
    )(x2, w1b, b1p, w2b, b2p, w3b, b3p)

    # drop channel padding, back to NCHW
    out = out2d[:, :cout].reshape(N, H, W, cout)
    return jnp.transpose(out, (0, 3, 1, 2))


def init_params(key, inplanes, planes, base_width=64, groups=1, expansion=4):
    width = int(planes * (base_width / 64.0)) * groups
    cout = planes * expansion
    keys = jax.random.split(key, 15)
    p = {
        'w1': 0.05 * jax.random.normal(keys[0], (width, inplanes, 1, 1), jnp.float32),
        'w2': 0.05 * jax.random.normal(keys[1], (width, width, 3, 3), jnp.float32),
        'w3': 0.05 * jax.random.normal(keys[2], (cout, width, 1, 1), jnp.float32),
    }
    for i, c in zip((1, 2, 3), (width, width, cout)):
        base = 3 + 4 * (i - 1)
        p[f'bn{i}_gamma'] = 1.0 + 0.1 * jax.random.normal(keys[base + 0], (c,), jnp.float32)
        p[f'bn{i}_beta'] = 0.1 * jax.random.normal(keys[base + 1], (c,), jnp.float32)
        p[f'bn{i}_mean'] = 0.1 * jax.random.normal(keys[base + 2], (c,), jnp.float32)
        p[f'bn{i}_var'] = 1.0 + 0.2 * jax.random.uniform(keys[base + 3], (c,), jnp.float32)
    return p


def reference_forward(x_nchw, params):
    """Pure-JAX f32 reference (XLA convs) mirroring the PyTorch forward (eval-mode BN)."""
    def bn(y, g, b, m, v, eps=1e-5):
        g, b, m, v = (t.reshape(1, -1, 1, 1) for t in (g, b, m, v))
        return g * (y - m) / jnp.sqrt(v + eps) + b

    dn = ('NCHW', 'OIHW', 'NCHW')
    out = jax.lax.conv_general_dilated(x_nchw, params['w1'], (1, 1), 'VALID', dimension_numbers=dn)
    out = jax.nn.relu(bn(out, params['bn1_gamma'], params['bn1_beta'], params['bn1_mean'], params['bn1_var']))
    out = jax.lax.conv_general_dilated(out, params['w2'], (1, 1), ((1, 1), (1, 1)), dimension_numbers=dn)
    out = jax.nn.relu(bn(out, params['bn2_gamma'], params['bn2_beta'], params['bn2_mean'], params['bn2_var']))
    out = jax.lax.conv_general_dilated(out, params['w3'], (1, 1), 'VALID', dimension_numbers=dn)
    # sc_2 treated as identity (see TODO above)
    out = bn(out, params['bn3_gamma'], params['bn3_beta'], params['bn3_mean'], params['bn3_var'])
    return jax.nn.relu(out + x_nchw)


if __name__ == "__main__":
    key = jax.random.PRNGKey(0)
    N, H, W = 2, 8, 8
    planes = 16
    inplanes = planes * 4          # downsample=None requires inplanes == planes * expansion
    k_x, k_p = jax.random.split(key)

    params = init_params(k_p, inplanes, planes)
    x = jax.random.normal(k_x, (N, inplanes, H, W), jnp.float32)

    out = scconv_bottleneck_forward(x, params)
    out = jax.block_until_ready(out)

    ref = reference_forward(x, params)
    assert out.shape == ref.shape == (N, inplanes, H, W)
    # Kernel uses bf16 activations / MXU operands with f32 accumulation -> slightly
    # looser tolerance than an all-f32 path.
    np.testing.assert_allclose(np.asarray(out), np.asarray(ref), rtol=2e-2, atol=2e-2)

    print("KERNEL_OK")
</pallas_src>

<mosaic_0001>
module attributes {stable_mosaic.version = 11 : i64} {
  func.func @_bottleneck_kernel(%arg0: i32, %arg1: memref<64x128xbf16, #tpu.memory_space<vmem>>, %arg2: memref<128x128xbf16, #tpu.memory_space<vmem>>, %arg3: memref<1x128xf32, #tpu.memory_space<vmem>>, %arg4: memref<1152x128xbf16, #tpu.memory_space<vmem>>, %arg5: memref<1x128xf32, #tpu.memory_space<vmem>>, %arg6: memref<128x128xbf16, #tpu.memory_space<vmem>>, %arg7: memref<1x128xf32, #tpu.memory_space<vmem>>, %arg8: memref<64x128xf32, #tpu.memory_space<vmem>>, %arg9: memref<96x128xbf16, #tpu.memory_space<vmem>>, %arg10: memref<64x1152xbf16, #tpu.memory_space<vmem>>) attributes {dimension_semantics = [#tpu.dimension_semantics<parallel>], iteration_bounds = array<i64: 2>, scalar_prefetch = 0 : i64, scratch_operands = 2 : i64, tpu.core_type = #tpu.core_type<tc>, window_params = [{transform_indices = @transform_0, window_bounds = array<i64: 64, 128>}, {pipeline_mode = #tpu.pipeline_mode<synchronous>, transform_indices = @transform_1, window_bounds = array<i64: 128, 128>}, {pipeline_mode = #tpu.pipeline_mode<synchronous>, transform_indices = @transform_2, window_bounds = array<i64: 1, 128>}, {pipeline_mode = #tpu.pipeline_mode<synchronous>, transform_indices = @transform_3, window_bounds = array<i64: 1152, 128>}, {pipeline_mode = #tpu.pipeline_mode<synchronous>, transform_indices = @transform_4, window_bounds = array<i64: 1, 128>}, {pipeline_mode = #tpu.pipeline_mode<synchronous>, transform_indices = @transform_5, window_bounds = array<i64: 128, 128>}, {pipeline_mode = #tpu.pipeline_mode<synchronous>, transform_indices = @transform_6, window_bounds = array<i64: 1, 128>}, {transform_indices = @transform_7, window_bounds = array<i64: 64, 128>}]} {
    %c0 = arith.constant 0 : index
    %c0_0 = arith.constant 0 : index
    %0 = vector.load %arg1[%c0, %c0_0] : memref<64x128xbf16, #tpu.memory_space<vmem>>, vector<64x128xbf16>
    %c0_1 = arith.constant 0 : index
    %c0_2 = arith.constant 0 : index
    %1 = vector.load %arg2[%c0_1, %c0_2] : memref<128x128xbf16, #tpu.memory_space<vmem>>, vector<128x128xbf16>
    %cst = arith.constant dense<0.000000e+00> : vector<64x128xf32>
    %2 = tpu.matmul %0, %1, %cst {dimension_numbers = #tpu.dot_dimension_numbers<[1], [0], [0], [1], [0, 0, 1, 1], [], []>} : vector<64x128xbf16>, vector<128x128xbf16>, vector<64x128xf32> -> vector<64x128xf32>
    %c0_3 = arith.constant 0 : index
    %c0_4 = arith.constant 0 : index
    %3 = vector.load %arg3[%c0_3, %c0_4] : memref<1x128xf32, #tpu.memory_space<vmem>>, vector<1x128xf32>
    %4 = vector.broadcast %3 : vector<1x128xf32> to vector<64x128xf32>
    %5 = arith.addf %2, %4 : vector<64x128xf32>
    %cst_5 = arith.constant 0.000000e+00 : f32
    %6 = vector.broadcast %cst_5 : f32 to vector<64x128xf32>
    %7 = arith.maximumf %5, %6 : vector<64x128xf32>
    %cst_6 = arith.constant 0.000000e+00 : bf16
    %8 = vector.broadcast %cst_6 : bf16 to vector<16x128xbf16>
    %c0_7 = arith.constant 0 : index
    %c0_8 = arith.constant 0 : index
    %9 = vector.load %arg9[%c0_7, %c0_8] : memref<96x128xbf16, #tpu.memory_space<vmem>>, vector<16x128xbf16>
    tpu.vector_store %arg9[%c0_7, %c0_8], %8 {strides = array<i32>} : memref<96x128xbf16, #tpu.memory_space<vmem>>, vector<16x128xbf16>,
    %c80 = arith.constant 80 : index
    %c0_9 = arith.constant 0 : index
    %10 = vector.load %arg9[%c80, %c0_9] : memref<96x128xbf16, #tpu.memory_space<vmem>>, vector<16x128xbf16>
    tpu.vector_store %arg9[%c80, %c0_9], %8 {strides = array<i32>} : memref<96x128xbf16, #tpu.memory_space<vmem>>, vector<16x128xbf16>,
    %11 = arith.truncf %7 : vector<64x128xf32> to vector<64x128xbf16>
    %c16 = arith.constant 16 : index
    %c0_10 = arith.constant 0 : index
    %12 = vector.load %arg9[%c16, %c0_10] : memref<96x128xbf16, #tpu.memory_space<vmem>>, vector<64x128xbf16>
    tpu.vector_store %arg9[%c16, %c0_10], %11 {strides = array<i32>} : memref<96x128xbf16, #tpu.memory_space<vmem>>, vector<64x128xbf16>,
    %13 = tpu.iota {dimensions = array<i32: 0>} : vector<64x1xi32>
    %c8_i32 = arith.constant 8 : i32
    %c0_i32 = arith.constant 0 : i32
    %14 = arith.cmpi eq, %c8_i32, %c0_i32 : i32
    %c1_i32 = arith.constant 1 : i32
    %15 = arith.select %14, %c1_i32, %c8_i32 : i32
    %16 = vector.broadcast %15 : i32 to vector<64x1xi32>
    %17 = arith.remsi %13, %16 : vector<64x1xi32>
    %c0_i32_11 = arith.constant 0 : i32
    %18 = vector.broadcast %c0_i32_11 : i32 to vector<64x1xi32>
    %19 = arith.cmpi ne, %17, %18 : vector<64x1xi32>
    %c0_i32_12 = arith.constant 0 : i32
    %20 = vector.broadcast %c0_i32_12 : i32 to vector<64x1xi32>
    %21 = arith.cmpi slt, %17, %20 : vector<64x1xi32>
    %c0_i32_13 = arith.constant 0 : i32
    %22 = arith.cmpi slt, %15, %c0_i32_13 : i32
    %23 = vector.broadcast %22 : i1 to vector<64x1xi1>
    %24 = vector.broadcast %23 : vector<64x1xi1> to vector<64x1xi1>
    %25 = arith.xori %21, %24 : vector<64x1xi1>
    %26 = arith.andi %25, %19 : vector<64x1xi1>
    %27 = vector.broadcast %15 : i32 to vector<64x1xi32>
    %28 = arith.addi %17, %27 : vector<64x1xi32>
    %29 = arith.select %26, %28, %17 : vector<64x1xi1>, vector<64x1xi32>
    %c0_i32_14 = arith.constant 0 : i32
    %30 = vector.broadcast %c0_i32_14 : i32 to vector<64x1xi32>
    %31 = arith.cmpi sgt, %29, %30 : vector<64x1xi32>
    %c7_i32 = arith.constant 7 : i32
    %32 = vector.broadcast %c7_i32 : i32 to vector<64x1xi32>
    %33 = arith.cmpi slt, %29, %32 : vector<64x1xi32>
    %c7 = arith.constant 7 : index
    %c0_15 = arith.constant 0 : index
    %34 = vector.load %arg9[%c7, %c0_15] : memref<96x128xbf16, #tpu.memory_space<vmem>>, vector<64x128xbf16>
    %cst_16 = arith.constant 0.000000e+00 : f32
    %35 = arith.truncf %cst_16 : f32 to bf16
    %36 = vector.shape_cast %31 : vector<64x1xi1> to vector<64x1xi1>
    %37 = vector.broadcast %36 : vector<64x1xi1> to vector<64x128xi1>
    %38 = vector.broadcast %35 : bf16 to vector<64x128xbf16>
    %39 = arith.select %37, %34, %38 : vector<64x128xi1>, vector<64x128xbf16>
    %c0_17 = arith.constant 0 : index
    %c0_18 = arith.constant 0 : index
    %40 = vector.load %arg10[%c0_17, %c0_18] : memref<64x1152xbf16, #tpu.memory_space<vmem>>, vector<64x128xbf16>
    tpu.vector_store %arg10[%c0_17, %c0_18], %39 {strides = array<i32>} : memref<64x1152xbf16, #tpu.memory_space<vmem>>, vector<64x128xbf16>,
    %c8 = arith.constant 8 : index
    %c0_19 = arith.constant 0 : index
    %41 = vector.load %arg9[%c8, %c0_19] : memref<96x128xbf16, #tpu.memory_space<vmem>>, vector<64x128xbf16>
    %c0_20 = arith.constant 0 : index
    %c128 = arith.constant 128 : index
    %42 = vector.load %arg10[%c0_20, %c128] : memref<64x1152xbf16, #tpu.memory_space<vmem>>, vector<64x128xbf16>
    tpu.vector_store %arg10[%c0_20, %c128], %41 {strides = array<i32>} : memref<64x1152xbf16, #tpu.memory_space<vmem>>, vector<64x128xbf16>,
    %c9 = arith.constant 9 : index
    %c0_21 = arith.constant 0 : index
    %43 = vector.load %arg9[%c9, %c0_21] : memref<96x128xbf16, #tpu.memory_space<vmem>>, vector<64x128xbf16>
    %cst_22 = arith.constant 0.000000e+00 : f32
    %44 = arith.truncf %cst_22 : f32 to bf16
    %45 = vector.shape_cast %33 : vector<64x1xi1> to vector<64x1xi1>
    %46 = vector.broadcast %45 : vector<64x1xi1> to vector<64x128xi1>
    %47 = vector.broadcast %44 : bf16 to vector<64x128xbf16>
    %48 = arith.select %46, %43, %47 : vector<64x128xi1>, vector<64x128xbf16>
    %c0_23 = arith.constant 0 : index
    %c256 = arith.constant 256 : index
    %49 = vector.load %arg10[%c0_23, %c256] : memref<64x1152xbf16, #tpu.memory_space<vmem>>, vector<64x128xbf16>
    tpu.vector_store %arg10[%c0_23, %c256], %48 {strides = array<i32>} : memref<64x1152xbf16, #tpu.memory_space<vmem>>, vector<64x128xbf16>,
    %c15 = arith.constant 15 : index
    %c0_24 = arith.constant 0 : index
    %50 = vector.load %arg9[%c15, %c0_24] : memref<96x128xbf16, #tpu.memory_space<vmem>>, vector<64x128xbf16>
    %cst_25 = arith.constant 0.000000e+00 : f32
    %51 = arith.truncf %cst_25 : f32 to bf16
    %52 = vector.shape_cast %31 : vector<64x1xi1> to vector<64x1xi1>
    %53 = vector.broadcast %52 : vector<64x1xi1> to vector<64x128xi1>
    %54 = vector.broadcast %51 : bf16 to vector<64x128xbf16>
    %55 = arith.select %53, %50, %54 : vector<64x128xi1>, vector<64x128xbf16>
    %c0_26 = arith.constant 0 : index
    %c384 = arith.constant 384 : index
    %56 = vector.load %arg10[%c0_26, %c384] : memref<64x1152xbf16, #tpu.memory_space<vmem>>, vector<64x128xbf16>
    tpu.vector_store %arg10[%c0_26, %c384], %55 {strides = array<i32>} : memref<64x1152xbf16, #tpu.memory_space<vmem>>, vector<64x128xbf16>,
    %c16_27 = arith.constant 16 : index
    %c0_28 = arith.constant 0 : index
    %57 = vector.load %arg9[%c16_27, %c0_28] : memref<96x128xbf16, #tpu.memory_space<vmem>>, vector<64x128xbf16>
    %c0_29 = arith.constant 0 : index
    %c512 = arith.constant 512 : index
    %58 = vector.load %arg10[%c0_29, %c512] : memref<64x1152xbf16, #tpu.memory_space<vmem>>, vector<64x128xbf16>
    tpu.vector_store %arg10[%c0_29, %c512], %57 {strides = array<i32>} : memref<64x1152xbf16, #tpu.memory_space<vmem>>, vector<64x128xbf16>,
    %c17 = arith.constant 17 : index
    %c0_30 = arith.constant 0 : index
    %59 = vector.load %arg9[%c17, %c0_30] : memref<96x128xbf16, #tpu.memory_space<vmem>>, vector<64x128xbf16>
    %cst_31 = arith.constant 0.000000e+00 : f32
    %60 = arith.truncf %cst_31 : f32 to bf16
    %61 = vector.shape_cast %33 : vector<64x1xi1> to vector<64x1xi1>
    %62 = vector.broadcast %61 : vector<64x1xi1> to vector<64x128xi1>
    %63 = vector.broadcast %60 : bf16 to vector<64x128xbf16>
    %64 = arith.select %62, %59, %63 : vector<64x128xi1>, vector<64x128xbf16>
    %c0_32 = arith.constant 0 : index
    %c640 = arith.constant 640 : index
    %65 = vector.load %arg10[%c0_32, %c640] : memref<64x1152xbf16, #tpu.memory_space<vmem>>, vector<64x128xbf16>
    tpu.vector_store %arg10[%c0_32, %c640], %64 {strides = array<i32>} : memref<64x1152xbf16, #tpu.memory_space<vmem>>, vector<64x128xbf16>,
    %c23 = arith.constant 23 : index
    %c0_33 = arith.constant 0 : index
    %66 = vector.load %arg9[%c23, %c0_33] : memref<96x128xbf16, #tpu.memory_space<vmem>>, vector<64x128xbf16>
    %cst_34 = arith.constant 0.000000e+00 : f32
    %67 = arith.truncf %cst_34 : f32 to bf16
    %68 = vector.shape_cast %31 : vector<64x1xi1> to vector<64x1xi1>
    %69 = vector.broadcast %68 : vector<64x1xi1> to vector<64x128xi1>
    %70 = vector.broadcast %67 : bf16 to vector<64x128xbf16>
    %71 = arith.select %69, %66, %70 : vector<64x128xi1>, vector<64x128xbf16>
    %c0_35 = arith.constant 0 : index
    %c768 = arith.constant 768 : index
    %72 = vector.load %arg10[%c0_35, %c768] : memref<64x1152xbf16, #tpu.memory_space<vmem>>, vector<64x128xbf16>
    tpu.vector_store %arg10[%c0_35, %c768], %71 {strides = array<i32>} : memref<64x1152xbf16, #tpu.memory_space<vmem>>, vector<64x128xbf16>,
    %c24 = arith.constant 24 : index
    %c0_36 = arith.constant 0 : index
    %73 = vector.load %arg9[%c24, %c0_36] : memref<96x128xbf16, #tpu.memory_space<vmem>>, vector<64x128xbf16>
    %c0_37 = arith.constant 0 : index
    %c896 = arith.constant 896 : index
    %74 = vector.load %arg10[%c0_37, %c896] : memref<64x1152xbf16, #tpu.memory_space<vmem>>, vector<64x128xbf16>
    tpu.vector_store %arg10[%c0_37, %c896], %73 {strides = array<i32>} : memref<64x1152xbf16, #tpu.memory_space<vmem>>, vector<64x128xbf16>,
    %c25 = arith.constant 25 : index
    %c0_38 = arith.constant 0 : index
    %75 = vector.load %arg9[%c25, %c0_38] : memref<96x128xbf16, #tpu.memory_space<vmem>>, vector<64x128xbf16>
    %cst_39 = arith.constant 0.000000e+00 : f32
    %76 = arith.truncf %cst_39 : f32 to bf16
    %77 = vector.shape_cast %33 : vector<64x1xi1> to vector<64x1xi1>
    %78 = vector.broadcast %77 : vector<64x1xi1> to vector<64x128xi1>
    %79 = vector.broadcast %76 : bf16 to vector<64x128xbf16>
    %80 = arith.select %78, %75, %79 : vector<64x128xi1>, vector<64x128xbf16>
    %c0_40 = arith.constant 0 : index
    %c1024 = arith.constant 1024 : index
    %81 = vector.load %arg10[%c0_40, %c1024] : memref<64x1152xbf16, #tpu.memory_space<vmem>>, vector<64x128xbf16>
    tpu.vector_store %arg10[%c0_40, %c1024], %80 {strides = array<i32>} : memref<64x1152xbf16, #tpu.memory_space<vmem>>, vector<64x128xbf16>,
    %c0_41 = arith.constant 0 : index
    %c0_42 = arith.constant 0 : index
    %82 = vector.load %arg10[%c0_41, %c0_42] : memref<64x1152xbf16, #tpu.memory_space<vmem>>, vector<64x1152xbf16>
    %c0_43 = arith.constant 0 : index
    %c0_44 = arith.constant 0 : index
    %83 = vector.load %arg4[%c0_43, %c0_44] : memref<1152x128xbf16, #tpu.memory_space<vmem>>, vector<1152x128xbf16>
    %cst_45 = arith.constant dense<0.000000e+00> : vector<64x128xf32>
    %84 = tpu.matmul %82, %83, %cst_45 {dimension_numbers = #tpu.dot_dimension_numbers<[1], [0], [0], [1], [0, 0, 1, 1], [], []>} : vector<64x1152xbf16>, vector<1152x128xbf16>, vector<64x128xf32> -> vector<64x128xf32>
    %c0_46 = arith.constant 0 : index
    %c0_47 = arith.constant 0 : index
    %85 = vector.load %arg5[%c0_46, %c0_47] : memref<1x128xf32, #tpu.memory_space<vmem>>, vector<1x128xf32>
    %86 = vector.broadcast %85 : vector<1x128xf32> to vector<64x128xf32>
    %87 = arith.addf %84, %86 : vector<64x128xf32>
    %cst_48 = arith.constant 0.000000e+00 : f32
    %88 = vector.broadcast %cst_48 : f32 to vector<64x128xf32>
    %89 = arith.maximumf %87, %88 : vector<64x128xf32>
    %90 = arith.truncf %89 : vector<64x128xf32> to vector<64x128xbf16>
    %c0_49 = arith.constant 0 : index
    %c0_50 = arith.constant 0 : index
    %91 = vector.load %arg6[%c0_49, %c0_50] : memref<128x128xbf16, #tpu.memory_space<vmem>>, vector<128x128xbf16>
    %cst_51 = arith.constant dense<0.000000e+00> : vector<64x128xf32>
    %92 = tpu.matmul %90, %91, %cst_51 {dimension_numbers = #tpu.dot_dimension_numbers<[1], [0], [0], [1], [0, 0, 1, 1], [], []>} : vector<64x128xbf16>, vector<128x128xbf16>, vector<64x128xf32> -> vector<64x128xf32>
    %c0_52 = arith.constant 0 : index
    %c0_53 = arith.constant 0 : index
    %93 = vector.load %arg7[%c0_52, %c0_53] : memref<1x128xf32, #tpu.memory_space<vmem>>, vector<1x128xf32>
    %94 = vector.broadcast %93 : vector<1x128xf32> to vector<64x128xf32>
    %95 = arith.addf %92, %94 : vector<64x128xf32>
    %c0_54 = arith.constant 0 : index
    %c0_55 = arith.constant 0 : index
    %96 = vector.load %arg1[%c0_54, %c0_55] : memref<64x128xbf16, #tpu.memory_space<vmem>>, vector<64x128xbf16>
    %97 = arith.extf %96 : vector<64x128xbf16> to vector<64x128xf32>
    %98 = arith.addf %95, %97 : vector<64x128xf32>
    %cst_56 = arith.constant 0.000000e+00 : f32
    %99 = vector.broadcast %cst_56 : f32 to vector<64x128xf32>
    %100 = arith.maximumf %98, %99 : vector<64x128xf32>
    %c0_57 = arith.constant 0 : index
    %c0_58 = arith.constant 0 : index
    %101 = vector.load %arg8[%c0_57, %c0_58] : memref<64x128xf32, #tpu.memory_space<vmem>>, vector<64x128xf32>
    tpu.vector_store %arg8[%c0_57, %c0_58], %100 {strides = array<i32>} : memref<64x128xf32, #tpu.memory_space<vmem>>, vector<64x128xf32>,
    return
  }
  func.func @transform_0(%arg0: i32) -> (i32, i32) {
    %c0_i32 = arith.constant 0 : i32
    %c0_i32_0 = arith.constant 0 : i32
    return %arg0, %c0_i32 : i32, i32
  }
  func.func @transform_1(%arg0: i32) -> (i32, i32) {
    %c0_i32 = arith.constant 0 : i32
    %c0_i32_0 = arith.constant 0 : i32
    %c0_i32_1 = arith.constant 0 : i32
    return %c0_i32, %c0_i32_0 : i32, i32
  }
  func.func @transform_2(%arg0: i32) -> (i32, i32) {
    %c0_i32 = arith.constant 0 : i32
    %c0_i32_0 = arith.constant 0 : i32
    %c0_i32_1 = arith.constant 0 : i32
    return %c0_i32, %c0_i32_0 : i32, i32
  }
  func.func @transform_3(%arg0: i32) -> (i32, i32) {
    %c0_i32 = arith.constant 0 : i32
    %c0_i32_0 = arith.constant 0 : i32
    %c0_i32_1 = arith.constant 0 : i32
    return %c0_i32, %c0_i32_0 : i32, i32
  }
  func.func @transform_4(%arg0: i32) -> (i32, i32) {
    %c0_i32 = arith.constant 0 : i32
    %c0_i32_0 = arith.constant 0 : i32
    %c0_i32_1 = arith.constant 0 : i32
    return %c0_i32, %c0_i32_0 : i32, i32
  }
  func.func @transform_5(%arg0: i32) -> (i32, i32) {
    %c0_i32 = arith.constant 0 : i32
    %c0_i32_0 = arith.constant 0 : i32
    %c0_i32_1 = arith.constant 0 : i32
    return %c0_i32, %c0_i32_0 : i32, i32
  }
  func.func @transform_6(%arg0: i32) -> (i32, i32) {
    %c0_i32 = arith.constant 0 : i32
    %c0_i32_0 = arith.constant 0 : i32
    %c0_i32_1 = arith.constant 0 : i32
    return %c0_i32, %c0_i32_0 : i32, i32
  }
  func.func @transform_7(%arg0: i32) -> (i32, i32) {
    %c0_i32 = arith.constant 0 : i32
    %c0_i32_0 = arith.constant 0 : i32
    return %arg0, %c0_i32 : i32, i32
  }
}

</mosaic_0001>

<bundles_post_ra>
// kernel: tpu_custom_call.1
= control target key start
LH: loop header
LB: loop body
LE: loop exit
PB: predicated region body
PF: predicated region fallthrough
CT: control target
= control target key end

     0   :  { %s5627_s0 = inlined_call_operand.hbm [shape: bf16[128,128], index: 0, kind: input, shape index: {}]   ;;  %s5628_s1 = inlined_call_operand.hbm [shape: bf16[128,128], index: 1, kind: input, shape index: {}]   ;;  %s5629_s2 = inlined_call_operand.vmem [shape: f32[1,128], index: 2, kind: input, shape index: {}]   ;;  %s5630_s3 = inlined_call_operand.hbm [shape: bf16[1152,128], index: 3, kind: input, shape index: {}]   ;;  %s5631_s4 = inlined_call_operand.vmem [shape: f32[1,128], index: 4, kind: input, shape index: {}]   ;;  %s5632_s5 = inlined_call_operand.hbm [shape: bf16[128,128], index: 5, kind: input, shape index: {}]   ;;  %s5633_s6 = inlined_call_operand.vmem [shape: f32[1,128], index: 6, kind: input, shape index: {}]   ;;  %s5634_s7 = inlined_call_operand.hbm [shape: f32[128,128], index: 7, kind: output, shape index: {}]  }
   0x1   :  { %5673 = sst [smem:[#allocation49_spill]] %s5628_s1 }
   0x2   :  { %12 = vsyncpa [#allocation5], 0 }
   0x3   :  { %14 = vsyncpa [#allocation5 + $0x1], 0 }
   0x4   :  { %15 = vsyncpa [#allocation8], 0 }
   0x5   :  { %16 = vsyncpa [#allocation11], 0 }
   0x6   :  { %17 = vsyncpa [#allocation6], 0 }
   0x7   :  { %19 = vsyncpa [#allocation6 + $0x1], 0  ;;  %s4103_s24 = smov 0   ;;  %s4105_s25 = smov 0  }
   0x8   :  { %s4107_s26 = smov 0   ;;  %s4109_s27 = smov 0  }
   0x9 LB: > { %s4124_s28 = sadd.s32 4294967295, %s4053_s27   ;;  %s3042_s29 = sadd.s32 4294967294, %s4053_s27   ;;  %s4053_s27 = sphi %s4109_s27, %s5920_s27   ;;  %s4049_s26 = sphi %s4107_s26, %s5919_s26   ;;  %s4045_s25 = sphi %s4105_s25, %s5918_s25   ;;  %s4041_s24 = sphi %s4103_s24, %s5917_s24  }
   0xa   : > { %p45_p0 = scmp.ne.s32.totalorder %s4045_s25, %s4041_s24  ;;  %p46_p1 = scmp.eq.s32.totalorder %s4124_s28, 0 }
   0xb   : > { %p195_p2 = scmp.eq.s32.totalorder %s4124_s28, 1  ;;  %p201_p3 = scmp.eq.s32.totalorder %s3042_s29, 1 }
   0xc   : > { %p4133_p4 = por %p46_p1, %p45_p0  ;;  %p3043_p5 = scmp.ge.s32.totalorder %s4053_s27, 1 }
   0xd   : > { %p4138_p6 = por %p201_p3, %p45_p0  ;;  %p208_p7 = scmp.lt.s32.totalorder %s4053_s27, 3 }
   0xe   : > { %s5676_s1 = sld [smem:[#allocation49_spill]]  ;;  %s4055_s13 = smov [#allocation7]  }
   0xf   : > { %p4146_p8 = pnand %p3043_p5, %p208_p7  ;;  %s221_s14 = sshll.u32 %s4055_s13, 4  ;;  %s222_s14 = int_to_ptr.vmem [resolvable:$true] %s221_s14 }
  0x10   : > { %s236_s18 = sshll.u32 %s5630_s3, 4  ;;  %s5635_s19 = smov 64   ;;  %s237_s18 = int_to_ptr.hbm [resolvable:$true] %s236_s18 }
  0x11   : > { %p3790_p9 = pneg %p4146_p8  ;;  %s5636_s20 = smov 4  }
  0x12   : > { %s4058_s21 = smov [#allocation9]   ;;  %s253_s9 = sshll.u32 %s5632_s5, 4  ;;  %s254_s9 = int_to_ptr.hbm [resolvable:$true] %s253_s9 }
  0x13   : > { %p4154_p10 = pnand %p3790_p9, %p46_p1  ;;  %s238_s22 = sshll.u32 %s4058_s21, 4  ;;  %s239_s22 = int_to_ptr.vmem [resolvable:$true] %s238_s22 }
  0x14   : > { %s219_s11 = sshll.u32 %s5676_s1, 4  ;;  %s4059_s10 = smov [#allocation10]   ;;  %s220_s11 = int_to_ptr.hbm [resolvable:$true] %s219_s11 }
  0x15   : > { %3793 = dma.hbm_to_vmem [thread:$0]  (!%p4154_p10), %s220_s11, 1024, %s222_s14, [#allocation8], %s5635_s19, %s5635_s19, %s5636_s20  }
  0x16   : > { %3796 = dma.hbm_to_vmem [thread:$0]  (!%p4154_p10), %s237_s18, 9216, %s239_s22, [#allocation8], %s5635_s19, %s5635_s19, %s5636_s20  }
  0x17   : > { %s255_s11 = sshll.u32 %s4059_s10, 4  ;;  %s4176_s13 = sadd.s32 1, %s4053_s27   ;;  %s256_s11 = int_to_ptr.vmem [resolvable:$true] %s255_s11 }
  0x18   : > { %3799 = dma.hbm_to_vmem [thread:$0]  (!%p4154_p10), %s254_s9, 1024, %s256_s11, [#allocation11], %s5635_s19, %s5635_s19, %s5636_s20  }
  0x19   : > { %s29_s14 = ssub.s32 %s4053_s27, %s4176_s13  ;;  %s32_s16 = sadd.s32 1, %s4049_s26 }
  0x1a   : > { %p30_p12 = scmp.eq.s32.totalorder %s29_s14, 0  ;;  %p39_p13 = scmp.ne.s32.totalorder %s4049_s26, %s4045_s25 }
  0x1b   : > { %p40_p0 = scmp.eq.s32.totalorder %s4053_s27, 0  ;;  %p3811_p5 = scmp.lt.s32.totalorder %s4053_s27, 2 }
  0x1c   : > { %s4190_s17 = scalar_select %p30_p12, %s4049_s26, %s32_s16  }
  0x1d   : > { %p4194_p3 = por %p195_p2, %p39_p13  ;;  %s272_s21 = sand.u32 1, %s4049_s26  }
  0x1e   : > { %s3577_s15 = sshll.u32 %s4053_s27, 5  ;;  %p41_p7 = por %p40_p0, %p39_p13 }
  0x1f   : > { %s3048_s22 = sshll.u32 %s272_s21, 5  ;;  %s281_s9 = scalar_lea.hbm %s5627_s0, %s3577_s15 }
  0x20   : > { %s282_s10 = sshll.u32 %s281_s9, 4  ;;  %s276_s11 = scalar_lea.vmem [#allocation4], %s3048_s22  ;;  %s283_s10 = int_to_ptr.hbm [resolvable:$true] %s282_s10 }
  0x21   : > { %s284_s14 = sshll.u32 %s276_s11, 4  ;;  %p4204_p9 = pnand %p3811_p5, %p41_p7  ;;  %s285_s14 = int_to_ptr.vmem [resolvable:$true] %s284_s14 }
  0x22   : > { %s273_s19 = scalar_lea.sflag [#allocation5], %s272_s21  ;;  %s3949_s20 = sshra.s32 %s283_s10, 4  ;;  %s3950_s20 = int_to_ptr.hbm [resolvable:$true] %s3949_s20 }
  0x23   : > { %s3951_s1 = scalar_lea.hbm %s3950_s20, 32  ;;  %p3953_p10 = pneg %p4204_p9 }
  0x24   : > { %p3952_p2 = scmp.ne.s32.totalorder %s3950_s20, %s3951_s1  ;;  %s3956_s22 = scalar_lea.hbm %s5627_s0, 64 }
  0x25   : > { %p3957_p0 = scmp.lt.s32.totalorder %s3950_s20, %s5627_s0  ;;  %p3958_p5 = scmp.lt.s32.totalorder %s3956_s22, %s3951_s1 }
  0x26   : > { %p3954_p12 = pnand %p3953_p10, %p3952_p2 }
  0x27   : > { %p3959_p7 = por %p3958_p5, %p3957_p0 }
  0x28   : > { %p3955_p13 = pneg %p3954_p12 }
  0x2a   : > { %p3960_p11 = pnand %p3959_p7, %p3955_p13 }
  0x2c   : > { %3963 = shalt.err (!%p3960_p11)
}
  0x2d   : > { %s5681_s21 = smov 4   ;;  %s5682_s11 = smov 64  }
  0x2e   : > { %3803 = dma.hbm_to_vmem [thread:$0]  (!%p4204_p9), %s283_s10, 512, %s285_s14, %s273_s19, %s5682_s11, %s5682_s11, %s5681_s21  }
  0x2f   : > { %296 = sbr.rel (%p4146_p8) target bundleno = 773 (0x305), region = 48 }
  0x34   : > { %s4224_s15 = sand.u32 1, %s4045_s25  }
  0x35   : > { %s3052_s20 = sshll.u32 %s4224_s15, 5  ;;  %s299_s1 = scalar_lea.sflag [#allocation5], %s4224_s15 }
  0x36   : > { %s4228_s23 = scalar_lea.vmem [#allocation4], %s3052_s20 }
  0x37   : > { %4024 = dma.done.wait (%p4133_p4), %s299_s1, 512  }
  0x38   : > { %4026 = vsyncadd (%p4133_p4), %s299_s1, 4294966784 }
  0x39   : > { %4028 = dma.done.wait (%p46_p1), [#allocation8], 10240  }
  0x3a   : > { %4030 = vsyncadd (%p46_p1), [#allocation8], 4294957056 }
  0x3b   : > { %4032 = dma.done.wait (%p46_p1), [#allocation11], 1024  }
  0x3c   : > { %4034 = vsyncadd (%p46_p1), [#allocation11], 4294966272  ;;  %v3589_v0 = vld [vmem:[#allocation7 + $0x38] sm:$0xff]  ;;  %v3588_v1 = vld [vmem:[#allocation7 + $0x30] sm:$0xff]  ;;  %v511_v12 = vlaneseq  ;;  %v5639_v20 = vmov 0   ;;  %v5691_v59 = vmov 0 }
  0x3d   : > { %454 = vmatpush.bf16.msra.mxu0 %v3589_v0  ;;  %3750 = vmatpush.bf16.msra.mxu3 %v3589_v0  ;;  %v3587_v2 = vld [vmem:[#allocation7 + $0x28] sm:$0xff]  ;;  %v3586_v3 = vld [vmem:[#allocation7 + $0x20] sm:$0xff]  ;;  %v3585_v4 = vld [vmem:[#allocation7 + $0x18] sm:$0xff]  ;;  %492 = vst [vmem:[#allocation2 + $0x4] sm:$0xf] %v5639_v20  ;;  %v4308_v62 = vunpack.c.l.b16 %v5639_v20  ;;  %v4311_v63 = vunpack.c.h.b16 %v5639_v20  ;;  %s3056_s22 = sshll.u32 %s4224_s15, 6 }
  0x3e   : > { %v3584_v5 = vld [vmem:[#allocation7 + $0x10] sm:$0xff]  ;;  %v3583_v6 = vld [vmem:[#allocation7 + $0x8] sm:$0xff]  ;;  %v3582_v7 = vld [vmem:[#allocation7] sm:$0xff]  ;;  %v4246_v14 = vshrl.u32 %v511_v12, 7  ;;  %491 = vst [vmem:[#allocation2] sm:$0xf] %v5639_v20 }
  0x3f   : > { %v3578_v8 = vld [vmem:[%s4228_s23] sm:$0xff]  ;;  %v3580_v9 = vld [vmem:[%s4228_s23 + $0x10] sm:$0xff]  ;;  %v3579_v10 = vld [vmem:[%s4228_s23 + $0x8] sm:$0xff]  ;;  %493 = vst [vmem:[#allocation2 + $0x28] sm:$0xf] %v5639_v20  ;;  %s5580_s29 = scalar_lea.vmem [#allocation12], %s3056_s22 }
  0x40   : > { %v3581_v11 = vld [vmem:[%s4228_s23 + $0x18] sm:$0xff]  ;;  %v513_v15 = vadd.s32 8, %v4246_v14  ;;  %v3640_v16 = vld [vmem:[#allocation9 + $0x70] sm:$0xff]  ;;  %v514_v17 = vadd.s32 16, %v4246_v14  ;;  %v524_v18 = vand.u32 7, %v4246_v14  ;;  %v4253_v22 = vadd.s32 24, %v4246_v14 }
  0x41   : > { %455 = vmatpush.bf16.msra.mxu0 %v3588_v1  ;;  %3751 = vmatpush.bf16.msra.mxu3 %v3588_v1  ;;  %v3641_v13 = vld [vmem:[#allocation9 + $0x78] sm:$0xff]  ;;  %494 = vst [vmem:[#allocation2 + $0x2c] sm:$0xf] %v5639_v20  ;;  %v3639_v40 = vld [vmem:[#allocation9 + $0x68] sm:$0xff]  ;;  %v3656_v50 = vld [vmem:[#allocation9 + $0xf0] sm:$0xff]  ;;  %s3706_s9 = sshll.u32 %s4124_s28, 6 }
  0x42   : > { %2543 = vmatpush.bf16.msra.mxu2 %v3641_v13  ;;  %v531_v19 = vand.u32 7, %v513_v15  ;;  %vm616_vm0 = vcmp.gt.s32.totalorder %v524_v18, 0  ;;  %v538_v21 = vand.u32 7, %v514_v17  ;;  %v545_v23 = vand.u32 7, %v4253_v22  ;;  %v3657_v38 = vld [vmem:[#allocation9 + $0xf8] sm:$0xff]  ;;  %s2936_s20 = scalar_lea.hbm %s5634_s7, %s3706_s9  ;;  %s2937_s1 = sshll.u32 %s5580_s29, 4  ;;  %s2938_s1 = int_to_ptr.vmem [resolvable:$true] %s2937_s1 }
  0x43   : > { %vm657_vm2 = vmpackc.low %vm616_vm0, %vm616_vm0  ;;  %vm4260_vm6 = vcmp.lt.s32.totalorder %v524_v18, 7  ;;  %v3633_v39 = vld [vmem:[#allocation9 + $0x38] sm:$0xff]  ;;  %vm673_vm13 = vsmask.f32 3328  ;;  %vm674_vm14 = vsmask.f32 7440 }
  0x44   : > { %vm617_vm1 = vcmp.gt.s32.totalorder %v531_v19, 0  ;;  %vm618_vm3 = vcmp.gt.s32.totalorder %v538_v21, 0  ;;  %v665_v24 = vsel %vm657_vm2, 65537, %v5639_v20  ;;  %vm4267_vm7 = vcmp.gt.s32.totalorder %v545_v23, 0  ;;  %vm963_vm8 = vmpackc.low %vm4260_vm6, %vm4260_vm6  ;;  %2514 = vmatpush.bf16.msra.mxu1 %v3633_v39  ;;  %v3649_v44 = vld [vmem:[#allocation9 + $0xb8] sm:$0xff]  ;;  %s2925_s28 = scalar_lea.sflag [#allocation6], %s4224_s15 }
  0x45   : > { %456 = vmatpush.bf16.msra.mxu0 %v3587_v2  ;;  %3752 = vmatpush.bf16.msra.mxu3 %v3587_v2  ;;  %vm658_vm4 = vmpackc.low %vm617_vm1, %vm617_vm1  ;;  %v677_v27 = vshll.u32 %v665_v24, 16  ;;  %v680_v29 = vshrl.u32 %v665_v24, 16  ;;  %vm4275_vm9 = vcmp.lt.s32.totalorder %v531_v19, 7  ;;  %v971_v41 = vsel %vm963_vm8, 65537, %v5639_v20  ;;  %v4331_v13 = vld [vmem:[%s5629_s2] ss:$0 sm:$0xff] }
  0x46   : > { %2544 = vmatpush.bf16.msra.mxu2 %v3640_v16  ;;  %vm659_vm5 = vmpackc.low %vm618_vm3, %vm618_vm3  ;;  %v666_v26 = vsel %vm658_vm4, 65537, %v5639_v20  ;;  %v980_v49 = vshrl.u32 %v971_v41, 16  ;;  %vm4292_vm12 = vcmp.lt.s32.totalorder %v538_v21, 7  ;;  %v983_v58 = vshll.u32 %v971_v41, 16  ;;  %s3999_s14 = scalar_lea.hbm %s5634_s7, 128 }
  0x47   : > { %v667_v30 = vsel %vm659_vm5, 65537, %v5639_v20  ;;  %v686_v31 = vshll.u32 %v666_v26, 16  ;;  %v690_v32 = vshrl.u32 %v666_v26, 16  ;;  %vm660_vm10 = vmpackc.low %vm4267_vm7, %vm4267_vm7  ;;  %v4282_v34 = vrot.slane %v677_v27, 5 }
  0x48   : > { %v682_v35 = vrot.slane %v680_v29, 4  ;;  %v696_v36 = vshll.u32 %v667_v30, 16  ;;  %v700_v37 = vshrl.u32 %v667_v30, 16  ;;  %v4286_v45 = vsel %vm660_vm10, 65537, %v5639_v20  ;;  %vm964_vm11 = vmpackc.low %vm4275_vm9, %vm4275_vm9 }
  0x49   : > { %457 = vmatpush.bf16.msra.mxu0 %v3586_v3  ;;  %3753 = vmatpush.bf16.msra.mxu3 %v3586_v3  ;;  %v688_v42 = vrot.slane %v686_v31, 5  ;;  %v692_v43 = vrot.slane %v690_v32, 4  ;;  %v972_v53 = vsel %vm964_vm11, 65537, %v5639_v20  ;;  %v706_v54 = vshll.u32 %v4286_v45, 16  ;;  %vm965_vm15 = vmpackc.low %vm4292_vm12, %vm4292_vm12 }
  0x4a   : > { %2545 = vmatpush.bf16.msra.mxu2 %v3639_v40  ;;  %v683_v46 = vor.u32 %v682_v35, %v4282_v34  ;;  %v698_v47 = vrot.slane %v696_v36, 5  ;;  %v702_v48 = vrot.slane %v700_v37, 4  ;;  %v4301_v57 = vrot.slane %v980_v49, 7  ;;  %vm4303_vm0 = vmor %vm673_vm13, %vm674_vm14 }
  0x4b   : > { %v693_v52 = vor.u32 %v692_v43, %v688_v42  ;;  %v5692_v59 = vsel %vm4303_vm0, 4294967295, %v5691_v59  ;;  %v988_v60 = vshrl.u32 %v972_v53, 16  ;;  %v4313_v1 = vrot.slane %v706_v54, 5 }
  0x4c   : > { %v684_v55 = vrot.slane %v683_v46, 4  ;;  %v703_v56 = vor.u32 %v702_v48, %v698_v47  ;;  %vm827_vm1 = vsmask.f32 256  ;;  %v4316_v2 = vadd.s32 32, %v4246_v14 }
  0x4d   : > { %458 = vmatpush.bf16.msra.mxu0 %v3585_v4  ;;  %3754 = vmatpush.bf16.msra.mxu3 %v3585_v4  ;;  %v694_v61 = vrot.slane %v693_v52, 4  ;;  %v4319_v3 = vadd.s32 40, %v4246_v14  ;;  %vm828_vm2 = vsmask.f32 4368  ;;  %v755_v16 = vunpack.c.l.b16 %v4282_v34 }
  0x4e   : > { %v689_v4 = vsel %vm4303_vm0, %v684_v55, %v688_v42  ;;  %v552_v12 = vand.u32 7, %v4316_v2  ;;  %v756_v17 = vunpack.c.h.b16 %v4282_v34  ;;  %v4341_v24 = vadd.s32 48, %v4246_v14  ;;  %vm4362_vm5 = vmor %vm827_vm1, %vm828_vm2 }
  0x4f   : > { %v4335_v15 = vsel %vm4303_vm0, %v694_v61, %v698_v47  ;;  %v559_v18 = vand.u32 7, %v4319_v3  ;;  %v762_v19 = vunpack.c.l.b16 %v689_v4  ;;  %v763_v27 = vunpack.c.h.b16 %v689_v4 }
  0x50   : > { %vm4345_vm3 = vcmp.gt.s32.totalorder %v552_v12, 0  ;;  %v5697_v31 = vmov 0  ;;  %v986_v32 = vrot.slane %v4301_v57, 4  ;;  %v566_v35 = vand.u32 7, %v4341_v24 }
  0x51   : > { %459 = vmatpush.bf16.msra.mxu0 %v3584_v5  ;;  %3755 = vmatpush.bf16.msra.mxu3 %v3584_v5  ;;  %v704_v5 = vrot.slane %v703_v56, 4  ;;  %vm4356_vm4 = vcmp.gt.s32.totalorder %v559_v18, 0  ;;  %v5698_v31 = vsel %vm4362_vm5, 4294967295, %v5697_v31  ;;  %v769_v37 = vunpack.c.l.b16 %v4335_v15  ;;  %vm661_vm6 = vmpackc.low %vm4345_vm3, %vm4345_vm3 }
  0x52   : > { %v4373_v39 = vadd.s32 56, %v4246_v14  ;;  %vm4379_vm7 = vcmp.ne.s32.totalorder %v755_v16, %v4308_v62  ;;  %vm4384_vm8 = vcmp.ne.s32.totalorder %v756_v17, %v4311_v63  ;;  %vm662_vm9 = vmpackc.low %vm4356_vm4, %vm4356_vm4  ;;  %v710_v47 = vshrl.u32 %v4286_v45, 16 }
  0x53   : > { %v4352_v26 = vsel %vm4303_vm0, %v704_v5, %v4313_v1  ;;  %vm4397_vm10 = vcmp.ne.s32.totalorder %v762_v19, %v4308_v62  ;;  %vm4408_vm12 = vcmp.gt.s32.totalorder %v566_v35, 0  ;;  %vm4429_vm14 = vcmp.ne.s32.totalorder %v763_v27, %v4311_v63 }
  0x54   : > { %v776_v43 = vunpack.c.l.b16 %v4352_v26  ;;  %v5640_v56 = vand.u32 7, %v4373_v39  ;;  %vm663_vm1 = vmpackc.low %vm4408_vm12, %vm4408_vm12  ;;  %v712_v16 = vrot.slane %v710_v47, 4  ;;  %v777_v29 = vunpack.c.h.b16 %v4352_v26 }
  0x55   : > { %460 = vmatpush.bf16.msra.mxu0 %v3583_v6  ;;  %3756 = vmatpush.bf16.msra.mxu3 %v3583_v6  ;;  %v973_v6 = vsel %vm965_vm15, 65537, %v5639_v20  ;;  %vm4434_vm15 = vcmp.ne.s32.totalorder %v769_v37, %v4308_v62  ;;  %v671_v25 = vsel %vm663_vm1, 65537, %v5639_v20  ;;  %vm4487_vm12 = vmpackc.low %vm4384_vm8, %vm4379_vm7  ;;  %v5733_v48 = vmov 0 }
  0x56   : > { %v997_v21 = vshrl.u32 %v973_v6, 16  ;;  %v1000_v14 = vshll.u32 %v973_v6, 16  ;;  %vm4454_vm3 = vcmp.gt.s32.totalorder %v5640_v56, 0  ;;  %v713_v26 = vor.u32 %v712_v16, %v4313_v1  ;;  %vm4500_vm1 = vmpackc.low %vm4429_vm14, %vm4397_vm10 }
  0x57   : > { %vm4505_vm7 = vcmp.ne.s32.totalorder %v777_v29, %v4311_v63  ;;  %vm4519_vm10 = vcmp.lt.s32.totalorder %v545_v23, 7 }
  0x59   : > { %461 = vmatpush.bf16.msra.mxu0 %v3582_v7  ;;  %3757 = vmatpush.bf16.msra.mxu3 %v3582_v7  ;;  %v985_v7 = vor.u32 %v983_v58, %v4301_v57  ;;  %v670_v57 = vsel %vm662_vm9, 65537, %v5639_v20 }
  0x5a   : > { %v726_v17 = vshll.u32 %v670_v57, 16  ;;  %v730_v27 = vshrl.u32 %v670_v57, 16 }
  0x5b   : > { %v1050_v28 = vunpack.c.l.b16 %v985_v7  ;;  %v1051_v34 = vunpack.c.h.b16 %v985_v7 }
  0x5c   : > { %462 = vmatmul.bf16.vlgmr.msra.gmra.mxu0 %v3578_v8  ;;  %472 = vmatmul.bf16.vlgmr.msra.gmra.mxu3 %v3580_v9  ;;  %v3632_v8 = vld [vmem:[#allocation9 + $0x30] sm:$0xff]  ;;  %v3638_v9 = vld [vmem:[#allocation9 + $0x60] sm:$0xff] }
  0x5d   : > { %2601 = vmatpush.bf16.msrb.mxu0 %v3657_v38  ;;  %2572 = vmatpush.bf16.msrb.mxu3 %v3649_v44  ;;  %v770_v38 = vunpack.c.h.b16 %v4335_v15  ;;  %v4389_v44 = vrot.slane %v997_v21, 7  ;;  %vm4402_vm11 = vcmp.ne.s32.totalorder %v1050_v28, %v4308_v62  ;;  %vm4416_vm13 = vcmp.ne.s32.totalorder %v1051_v34, %v4311_v63 }
  0x5e   : > { %2515 = vmatpush.bf16.msra.mxu1 %v3632_v8  ;;  %2546 = vmatpush.bf16.msra.mxu2 %v3638_v9  ;;  %v938_v9 = vld [vmem:[#allocation2 + $0x4] sm:$0xf]  ;;  %vm4447_vm2 = vmpackc.low %vm4416_vm13, %vm4402_vm11  ;;  %vm4492_vm13 = vcmp.ne.s32.totalorder %v776_v43, %v4308_v62 }
  0x5f   : > { %vm4460_vm4 = vcmp.ne.s32.totalorder %v770_v38, %v4311_v63  ;;  %vm664_vm11 = vmpackc.low %vm4454_vm3, %vm4454_vm3 }
  0x60   : > { %v4529_v57 = vsel %vm664_vm11, 65537, %v5639_v20  ;;  %vm4535_vm14 = vmpackc.low %vm4460_vm4, %vm4434_vm15  ;;  %vm4557_vm15 = vcmp.lt.s32.totalorder %v559_v18, 7  ;;  %vm4565_vm4 = vcmp.lt.s32.totalorder %v566_v35, 7  ;;  %v3647_v18 = vld [vmem:[#allocation9 + $0xa8] sm:$0xff] }
  0x61   : > { %2602 = vmatpush.bf16.msrb.mxu0 %v3656_v50  ;;  %v728_v50 = vrot.slane %v726_v17, 5  ;;  %vm4549_vm3 = vmpackc.low %vm4505_vm7, %vm4492_vm13  ;;  %v746_v16 = vshll.u32 %v4529_v57, 16 }
  0x62   : > { %vm969_vm7 = vmpackc.low %vm4565_vm4, %vm4565_vm4 }
  0x6c   : > { %467 = vmatmul.bf16.gmra.mxu0 %v3579_v10  ;;  %477 = vmatmul.bf16.gmra.mxu3 %v3581_v11  ;;  %v4325_v10 = vrot.slane %v988_v60, 7  ;;  %v991_v11 = vshll.u32 %v972_v53, 16  ;;  %v669_v53 = vsel %vm661_vm6, 65537, %v5639_v20 }
  0x6d   : > { %v716_v6 = vshll.u32 %v669_v53, 16  ;;  %v720_v7 = vshrl.u32 %v669_v53, 16  ;;  %v633_v53 = vld [vmem:[#allocation2 + $0x4] sm:$0xf] }
  0x6e   : > { %v993_v33 = vor.u32 %v991_v11, %v4325_v10  ;;  %v995_v61 = vrot.slane %v4325_v10, 4  ;;  %v4575_v3 = vsel %vm4500_vm1, %v633_v53, 0 }
  0x6f   : > { %v722_v37 = vrot.slane %v720_v7, 4  ;;  %v3648_v7 = vld [vmem:[#allocation9 + $0xb0] sm:$0xff] }
  0x70   : > { %v994_v45 = vsel %vm4362_vm5, %v986_v32, %v993_v33  ;;  %v740_v32 = vshrl.u32 %v671_v25, 16  ;;  %v1113_v33 = vsel %vm4447_vm2, %v938_v9, 0  ;;  %2573 = vmatpush.bf16.msrb.mxu3 %v3648_v7 }
  0x71   : > { %v1057_v5 = vunpack.c.l.b16 %v994_v45  ;;  %v1058_v10 = vunpack.c.h.b16 %v994_v45  ;;  %v1222_v45 = vld [vmem:[#allocation2 + $0x4] sm:$0x8]  ;;  %v1126_v23 = vshll.u32 %v1113_v33, 16 }
  0x72   : > { %v742_v52 = vrot.slane %v740_v32, 4 }
  0x73   : > { %vm4470_vm6 = vcmp.ne.s32.totalorder %v1057_v5, %v4308_v62  ;;  %vm4475_vm9 = vcmp.ne.s32.totalorder %v1058_v10, %v4311_v63 }
  0x74   : > { %vm4513_vm8 = vmpackc.low %vm4475_vm9, %vm4470_vm6  ;;  %vm4541_vm6 = vcmp.lt.s32.totalorder %v552_v12, 7  ;;  %2574 = vmatpush.bf16.msrb.mxu3 %v3647_v18  ;;  %v3636_v18 = vld [vmem:[#allocation9 + $0x50] sm:$0xff] }
  0x75   : > { %v5734_v48 = vsel %vm4513_vm8, 4294967295, %v5733_v48  ;;  %vm5753_vm9 = vmpackc.low %vm4519_vm10, %vm4519_vm10 }
  0x76   : > { %v4626_v38 = vsel %vm5753_vm9, 65537, %v5639_v20  ;;  %vm5756_vm10 = vmpackc.low %vm4557_vm15, %vm4557_vm15 }
  0x77   : > { %v4656_v53 = vsel %vm5756_vm10, 65537, %v5639_v20  ;;  %v1006_v56 = vshrl.u32 %v4626_v38, 16  ;;  %v1009_v11 = vshll.u32 %v4626_v38, 16 }
  0x78   : > { %v1027_v1 = vshll.u32 %v4656_v53, 16 }
  0xd9   : > { %v463_v0 = vpop.f32.mrf.mxu0 }
  0xda   : > { %v464_v36 = vadd.f32 %v4331_v13, %v463_v0  ;;  %v1002_v0 = vor.u32 %v1000_v14, %v4389_v44  ;;  %v736_v14 = vshll.u32 %v671_v25, 16 }
  0xdc   : > { %v483_v54 = vmax.f32 %v464_v36, 0.0  ;;  %v718_v36 = vrot.slane %v716_v6, 5  ;;  %v738_v5 = vrot.slane %v736_v14, 5  ;;  %v1231_v6 = vsel %vm4487_vm12, %v1222_v45, 0 }
  0xdd   : > { %v4594_v25 = vshrl.u32 %v1231_v6, 16 }
  0xde   : > { %v723_v58 = vor.u32 %v722_v37, %v718_v36 }
  0xdf   : > { %v473_v30 = vpop.f32.mrf.mxu3 }
  0xe0   : > { %v474_v51 = vadd.f32 %v4331_v13, %v473_v30  ;;  %v1003_v30 = vsel %vm4362_vm5, %v995_v61, %v1002_v0  ;;  %v5737_v61 = vmov 0  ;;  %v724_v35 = vrot.slane %v723_v58, 4  ;;  %v3631_v0 = vld [vmem:[#allocation9 + $0x28] sm:$0xff] }
  0xe1   : > { %v465_v40 = vpop.f32.mrf.mxu0  ;;  %v1064_v42 = vunpack.c.l.b16 %v1003_v30  ;;  %v1065_v43 = vunpack.c.h.b16 %v1003_v30  ;;  %v5738_v61 = vsel %vm4535_vm14, 4294967295, %v5737_v61  ;;  %2516 = vmatpush.bf16.msra.mxu1 %v3631_v0 }
  0xe2   : > { %v466_v46 = vadd.f32 %v4331_v13, %v465_v40  ;;  %v487_v8 = vmax.f32 %v474_v51, 0.0  ;;  %v732_v51 = vrot.slane %v730_v27, 4  ;;  %v4618_v40 = vrot.slane %v746_v16, 5 }
  0xe3   : > { %vm4578_vm11 = vcmp.ne.s32.totalorder %v1064_v42, %v4308_v62  ;;  %vm4583_vm13 = vcmp.ne.s32.totalorder %v1065_v43, %v4311_v63  ;;  %v3655_v42 = vld [vmem:[#allocation9 + $0xe8] sm:$0xff] }
  0xe4   : > { %v484_v55 = vmax.f32 %v466_v46, 0.0  ;;  %v733_v12 = vor.u32 %v732_v51, %v728_v50  ;;  %vm4614_vm5 = vmpackc.low %vm4583_vm13, %vm4578_vm11  ;;  %v4642_v51 = vsel %vm4303_vm0, %v724_v35, %v728_v50  ;;  %v4664_v50 = vsel %vm969_vm7, 65537, %v5639_v20  ;;  %2603 = vmatpush.bf16.msrb.mxu0 %v3655_v42 }
  0xe5   : > { %vm5754_vm11 = vmpackc.low %vm4541_vm6, %vm4541_vm6  ;;  %v791_v16 = vunpack.c.h.b16 %v4642_v51 }
  0xe6   : > { %v3710_v4 = vpack.c.bf16 %v484_v55, %v483_v54  ;;  %v1123_v54 = vshrl.u32 %v1113_v33, 16  ;;  %v734_v33 = vrot.slane %v733_v12, 4 }
  0xe7   : > { %v475_v15 = vpop.f32.mrf.mxu3  ;;  %vm4786_vm13 = vcmp.ne.s32.totalorder %v791_v16, %v4311_v63 }
  0xe8   : > { %3743 = vst [vmem:[#allocation2 + $0x8] sm:$0xff] %v3710_v4   ;;  %v476_v19 = vadd.f32 %v4331_v13, %v475_v15  ;;  %v714_v4 = vrot.slane %v713_v26, 4  ;;  %v743_v15 = vor.u32 %v742_v52, %v738_v5  ;;  %v4590_v17 = vrot.slane %v1123_v54, 4 }
  0xe9   : > { %v4634_v26 = vsel %vm5754_vm11, 65537, %v5639_v20 }
  0xea   : > { %v488_v34 = vmax.f32 %v476_v19, 0.0  ;;  %v4592_v19 = vrot.slane %v1126_v23, 5  ;;  %v4598_v27 = vsel %vm4303_vm0, %v714_v4, %v718_v36  ;;  %v744_v37 = vrot.slane %v743_v15, 4 }
  0xeb   : > { %v4672_v23 = vsel %vm4303_vm0, %v734_v33, %v738_v5  ;;  %v790_v15 = vunpack.c.l.b16 %v4642_v51 }
  0xec   : > { %v3720_v49 = vpack.c.bf16 %v488_v34, %v487_v8  ;;  %v4686_v5 = vsel %vm4303_vm0, %v744_v37, %v4618_v40  ;;  %v798_v37 = vunpack.c.h.b16 %v4672_v23 }
  0xed   : > { %vm4779_vm9 = vcmp.ne.s32.totalorder %v790_v15, %v4308_v62  ;;  %v5778_v15 = vmov 0 }
  0xee   : > { %3745 = vst [vmem:[#allocation2 + $0x18] sm:$0xff] %v3720_v49   ;;  %vm4735_vm15 = vcmp.ne.s32.totalorder %v798_v37, %v4311_v63 }
  0xef   : > { %v939_v22 = vld [vmem:[#allocation2 + $0x8] sm:$0xf]  ;;  %v635_v28 = vld [vmem:[#allocation2 + $0xc] sm:$0xf]  ;;  %v4803_v37 = vpop.f32.mrf.mxu3 }
  0xf0   : > { %v634_v8 = vld [vmem:[#allocation2 + $0x8] sm:$0xf]  ;;  %v1114_v9 = vsel %vm4513_vm8, %v939_v22, 0  ;;  %v940_v34 = vld [vmem:[#allocation2 + $0xc] sm:$0xf]  ;;  %v4647_v43 = vsel %vm4549_vm3, %v635_v28, 0  ;;  %v797_v28 = vunpack.c.l.b16 %v4672_v23 }
  0xf1   : > { %v1223_v21 = vld [vmem:[#allocation2 + $0x8] sm:$0xf]  ;;  %v4605_v29 = vsel %vm4535_vm14, %v634_v8, 0  ;;  %v1132_v30 = vshll.u32 %v1114_v9, 16  ;;  %v1136_v32 = vshrl.u32 %v1114_v9, 16  ;;  %5755 = vst [vmem:[#allocation17_spill] sm:$0xff] %v4647_v43 }
  0xf2   : > { %v1224_v14 = vld [vmem:[#allocation2 + $0xc] sm:$0xf]  ;;  %v4638_v47 = vsel %vm4500_vm1, %v1223_v21, 0  ;;  %v1348_v49 = vld [vmem:[#allocation2 + $0x8] sm:$0xf]  ;;  %v845_v45 = vshrl.u32 %v4605_v29, 16  ;;  %vm4723_vm6 = vcmp.ne.s32.totalorder %v797_v28, %v4308_v62 }
  0xf3   : > { %v1332_v52 = vld [vmem:[#allocation2 + $0x8] sm:$0xf]  ;;  %v1115_v54 = vsel %vm4614_vm5, %v940_v34, 0  ;;  %v4668_v55 = vrot.slane %v1132_v30, 5  ;;  %v1138_v58 = vrot.slane %v1136_v32, 4  ;;  %v4676_v4 = vsel %vm4535_vm14, %v1224_v14, 0 }
  0xf4   : > { %v1349_v22 = vld [vmem:[#allocation2 + $0xc] sm:$0xf]  ;;  %v1246_v6 = vshrl.u32 %v4638_v47, 16  ;;  %v1357_v2 = vsel %vm4447_vm2, %v1348_v49, 0  ;;  %v854_v9 = vshrl.u32 %v4647_v43, 16  ;;  %v1142_v24 = vshll.u32 %v1115_v54, 16 }
  0xf5   : > { %5757 = vst [vmem:[#allocation18_spill] sm:$0xff] %v4668_v55  ;;  %v1576_v12 = vld [vmem:[#allocation2 + $0xc] sm:$0xf]  ;;  %v1146_v35 = vshrl.u32 %v1115_v54, 16  ;;  %v1358_v21 = vsel %vm4513_vm8, %v1349_v22, 0  ;;  %v3654_v30 = vld [vmem:[#allocation9 + $0xe0] sm:$0xff]  ;;  %v1139_v49 = vor.u32 %v1138_v58, %v4668_v55  ;;  %v804_v54 = vunpack.c.l.b16 %v4686_v5 }
  0xf6   : > { %v3637_v8 = vld [vmem:[#allocation9 + $0x58] sm:$0xff]  ;;  %1584 = vst [vmem:[#allocation3 + $0x1c] sm:$0xf] %v1576_v12  ;;  %v1255_v32 = vshrl.u32 %v4676_v4, 16  ;;  %v1367_v33 = vshrl.u32 %v1357_v2, 16  ;;  %v1370_v34 = vshll.u32 %v1357_v2, 16  ;;  %2604 = vmatpush.bf16.msrb.mxu0 %v3654_v30 }
  0xf7   : > { %v1333_v10 = vld [vmem:[#allocation2 + $0xc] sm:$0xf]  ;;  %2547 = vmatpush.bf16.msra.mxu2 %v3637_v8  ;;  %1340 = vst [vmem:[#allocation3 + $0x10] sm:$0xf] %v1332_v52  ;;  %v4697_v42 = vrot.slane %v1246_v6, 7  ;;  %v3630_v22 = vld [vmem:[#allocation9 + $0x20] sm:$0xff] }
  0xf8   : > { %1341 = vst [vmem:[#allocation3 + $0x34] sm:$0xf] %v1333_v10  ;;  %v4700_v0 = vrot.slane %v845_v45, 7  ;;  %v4702_v12 = vrot.slane %v854_v9, 7  ;;  %v1376_v2 = vshll.u32 %v1358_v21, 16  ;;  %v4705_v23 = vrot.slane %v1142_v24, 5  ;;  %2517 = vmatpush.bf16.msra.mxu1 %v3630_v22 }
  0xf9   : > { %v4707_v8 = vrot.slane %v1146_v35, 4  ;;  %v1466_v6 = vld [vmem:[#allocation2 + $0x8] sm:$0x8]  ;;  %v805_v10 = vunpack.c.h.b16 %v4686_v5  ;;  %v4711_v30 = vrot.slane %v1255_v32, 7  ;;  %v1369_v9 = vrot.slane %v1367_v33, 4  ;;  %v3634_v43 = vld [vmem:[#allocation9 + $0x40] sm:$0xff] }
  0xfa   : > { %5758 = vst [vmem:[#allocation19_spill] sm:$0xff] %v4702_v12  ;;  %v1372_v14 = vrot.slane %v1370_v34, 5  ;;  %v1467_v20 = vld [vmem:[#allocation2 + $0xc] sm:$0xf]  ;;  %v4714_v52 = vrot.slane %v1139_v49, 4  ;;  %v1380_v35 = vshrl.u32 %v1358_v21, 16 }
  0xfb   : > { %5759 = vst [vmem:[#allocation20_spill] sm:$0xff] %v4707_v8  ;;  %2548 = vmatpush.bf16.msra.mxu2 %v3636_v18  ;;  %v4718_v58 = vrot.slane %v1376_v2, 5  ;;  %v1475_v5 = vsel %vm4487_vm12, %v1466_v6, 0  ;;  %v1592_v32 = vld [vmem:[#allocation2 + $0xc] sm:$0xf]  ;;  %v1015_v33 = vshrl.u32 %v4634_v26, 16  ;;  %vm4757_vm4 = vcmp.ne.s32.totalorder %v805_v10, %v4311_v63 }
  0xfc   : > { %v3646_v34 = vld [vmem:[#allocation9 + $0xa0] sm:$0xff]  ;;  %v4730_v21 = vsel %vm4500_vm1, %v1467_v20, 0  ;;  %v1008_v49 = vrot.slane %v1006_v56, 7  ;;  %v1018_v2 = vshll.u32 %v4634_v26, 16  ;;  %v1024_v18 = vshrl.u32 %v4656_v53, 16  ;;  %v3653_v26 = vld [vmem:[#allocation9 + $0xd8] sm:$0xff] }
  0xfd   : > { %5760 = vst [vmem:[#allocation21_spill] sm:$0xff] %v4718_v58  ;;  %v1373_v24 = vor.u32 %v1372_v14, %v1369_v9  ;;  %v4739_v28 = vrot.slane %v1015_v33, 7  ;;  %v1033_v45 = vshrl.u32 %v4664_v50, 16  ;;  %2575 = vmatpush.bf16.msrb.mxu3 %v3646_v34  ;;  %v4742_v7 = vrot.slane %v1380_v35, 4  ;;  %v3629_v35 = vld [vmem:[#allocation9 + $0x18] sm:$0xff]  ;;  %2605 = vmatpush.bf16.msrb.mxu0 %v3653_v26  ;;  %v3635_v6 = vld [vmem:[#allocation9 + $0x48] sm:$0xff] }
  0xfe   : > { %5763 = vst [vmem:[#allocation22_spill] sm:$0xff] %v4730_v21  ;;  %v1601_v20 = vsel %vm4447_vm2, %v1592_v32, 0  ;;  %v4746_v56 = vrot.slane %v1024_v18, 7  ;;  %v4749_v14 = vshrl.u32 %v1475_v5, 16  ;;  %vm4752_vm1 = vcmp.ne.s32.totalorder %v804_v54, %v4308_v62  ;;  %v638_v32 = vld [vmem:[#allocation2 + $0x18] sm:$0xf]  ;;  %vm4766_vm2 = vmpackc.low %vm4735_vm15, %vm4723_vm6  ;;  %2518 = vmatpush.bf16.msra.mxu1 %v3629_v35 }
  0xff   : > { %v5771_v53 = vmov 0  ;;  %v1013_v54 = vrot.slane %v1008_v49, 4  ;;  %v1020_v5 = vor.u32 %v1018_v2, %v4739_v28  ;;  %v4771_v33 = vrot.slane %v1033_v45, 7  ;;  %v3645_v2 = vld [vmem:[#allocation9 + $0x98] sm:$0xff]  ;;  %v3652_v45 = vld [vmem:[#allocation9 + $0xd0] sm:$0xff]  ;;  %vm4794_vm7 = vmpackc.low %vm4757_vm4, %vm4752_vm1  ;;  %2549 = vmatpush.bf16.msra.mxu2 %v3635_v6 }
 0x100   : > { %5766 = vst [vmem:[#allocation23_spill] sm:$0xff] %v4749_v14  ;;  %v5772_v53 = vsel %vm4766_vm2, 4294967295, %v5771_v53  ;;  %v1036_v10 = vshll.u32 %v4664_v50, 16  ;;  %v1490_v38 = vshrl.u32 %v4730_v21, 16  ;;  %v1611_v18 = vshrl.u32 %v1601_v20, 16  ;;  %v3628_v9 = vld [vmem:[#allocation9 + $0x10] sm:$0xff]  ;;  %vm4839_vm15 = vmpackc.low %vm4786_vm13, %vm4779_vm9  ;;  %v480_v50 = vpop.f32.mrf.mxu3 }
 0x101   : > { %5773 = vst [vmem:[#allocation24_spill] sm:$0xff] %v5772_v53  ;;  %v1614_v41 = vshll.u32 %v1601_v20, 16  ;;  %v5779_v15 = vsel %vm4794_vm7, 4294967295, %v5778_v15  ;;  %v1022_v26 = vrot.slane %v4739_v28, 4  ;;  %v1029_v35 = vor.u32 %v1027_v1, %v4746_v56  ;;  %v468_v20 = vpop.f32.mrf.mxu0  ;;  %v922_v34 = vld [vmem:[#allocation2 + $0x4] sm:$0xf]  ;;  %2576 = vmatpush.bf16.msrb.mxu3 %v3645_v2  ;;  %2606 = vmatpush.bf16.msrb.mxu0 %v3652_v45 }
 0x102   : > { %v923_v21 = vld [vmem:[#allocation2 + $0x8] sm:$0xf]  ;;  %v4800_v51 = vrot.slane %v1373_v24, 4  ;;  %v639_v16 = vld [vmem:[#allocation2 + $0x1c] sm:$0xf]  ;;  %v1004_v8 = vrot.slane %v4389_v44, 4  ;;  %v1011_v55 = vor.u32 %v1009_v11, %v1008_v49  ;;  %v1383_v28 = vor.u32 %v4742_v7, %v4718_v58  ;;  %2519 = vmatpush.bf16.msra.mxu1 %v3628_v9 }
 0x103   : > { %v5781_v1 = vunpack.c.l.b16 %v4598_v27  ;;  %v5784_v44 = vunpack.c.h.b16 %v4598_v27  ;;  %vm5787_vm6 = vnez %v5698_v31  ;;  %v1031_v11 = vrot.slane %v4746_v56, 4  ;;  %930 = vst [vmem:[#allocation3 + $0x4] sm:$0xf] %v922_v34  ;;  %2550 = vmatpush.bf16.msra.mxu2 %v3634_v43 }
 0x104   : > { %5780 = vst [vmem:[#allocation25_spill] sm:$0xff] %v4800_v51  ;;  %v1021_v49 = vsel %vm5787_vm6, %v1013_v54, %v1020_v5  ;;  %v1038_v7 = vor.u32 %v1036_v10, %v4771_v33  ;;  %v5788_v6 = vshll.u32 %v4638_v47, 16  ;;  %v5789_v27 = vshll.u32 %v4676_v4, 16  ;;  %v1227_v47 = vld [vmem:[#allocation2 + $0x18] sm:$0xf]  ;;  %v3644_v4 = vld [vmem:[#allocation9 + $0x90] sm:$0xff] }
 0x105   : > { %vm4810_vm11 = vcmp.ne.s32.totalorder %v5781_v1, %v4308_v62  ;;  %vm4817_vm10 = vcmp.ne.s32.totalorder %v5784_v44, %v4311_v63  ;;  %v4845_v54 = vsel %vm4766_vm2, %v638_v32, 0  ;;  %v4848_v5 = vadd.f32 %v4331_v13, %v468_v20  ;;  %931 = vst [vmem:[#allocation3 + $0x28] sm:$0xf] %v923_v21  ;;  %2577 = vmatpush.bf16.msrb.mxu3 %v3644_v4  ;;  %v3651_v21 = vld [vmem:[#allocation9 + $0xc8] sm:$0xff] }
 0x106   : > { %v4828_v2 = vor.u32 %v5788_v6, %v4697_v42  ;;  %v4833_v1 = vor.u32 %v5789_v27, %v4711_v30  ;;  %v1613_v10 = vrot.slane %v1611_v18, 4  ;;  %v1616_v34 = vrot.slane %v1614_v41, 5  ;;  %v1228_v6 = vld [vmem:[#allocation2 + $0x1c] sm:$0xf]  ;;  %2607 = vmatpush.bf16.msrb.mxu0 %v3651_v21  ;;  %vm4930_vm8 = vmpackc.low %vm4817_vm10, %vm4810_vm11 }
 0x107   : > { %v4852_v22 = vsel %vm4794_vm7, %v639_v16, 0  ;;  %v1030_v45 = vsel %vm5787_vm6, %v1022_v26, %v1029_v35  ;;  %v1012_v32 = vsel %vm5787_vm6, %v1004_v8, %v1011_v55  ;;  %v1078_v44 = vunpack.c.l.b16 %v1021_v49  ;;  %v3627_v18 = vld [vmem:[#allocation9 + $0x8] sm:$0xff] }
 0x108   : > { %v1079_v20 = vunpack.c.h.b16 %v1021_v49  ;;  %v4859_v41 = vrot.slane %v1383_v28, 4  ;;  %v4861_v9 = vrot.slane %v1490_v38, 7  ;;  %v1039_v16 = vsel %vm5787_vm6, %v1031_v11, %v1038_v7  ;;  %2520 = vmatpush.bf16.msra.mxu1 %v3627_v18  ;;  %v3643_v49 = vld [vmem:[#allocation9 + $0x88] sm:$0xff] }
 0x109   : > { %v4867_v26 = vsel %vm4839_vm15, %v1227_v47, 0  ;;  %v881_v55 = vshrl.u32 %v4845_v54, 16  ;;  %v890_v8 = vshrl.u32 %v4852_v22, 16  ;;  %v1085_v35 = vunpack.c.l.b16 %v1030_v45  ;;  %2578 = vmatpush.bf16.msrb.mxu3 %v3643_v49  ;;  %v1353_v51 = vld [vmem:[#allocation2 + $0x1c] sm:$0xf] }
 0x10a   : > { %5792 = vst [vmem:[#allocation26_spill] sm:$0xff] %v4859_v41  ;;  %v1086_v43 = vunpack.c.h.b16 %v1030_v45  ;;  %v1617_v28 = vor.u32 %v1616_v34, %v1613_v10  ;;  %v1071_v27 = vunpack.c.l.b16 %v1012_v32  ;;  %v1072_v38 = vunpack.c.h.b16 %v1012_v32  ;;  %v470_v10 = vpop.f32.mrf.mxu0  ;;  %v3650_v34 = vld [vmem:[#allocation9 + $0xc0] sm:$0xff] }
 0x10b   : > { %5793 = vst [vmem:[#allocation27_spill] sm:$0xff] %v4861_v9  ;;  %v4873_v4 = vsel %vm4766_vm2, %v1228_v6, 0  ;;  %vm4876_vm1 = vcmp.ne.s32.totalorder %v1078_v44, %v4308_v62  ;;  %vm4881_vm4 = vcmp.ne.s32.totalorder %v1079_v20, %v4311_v63  ;;  %v1092_v47 = vunpack.c.l.b16 %v1039_v16  ;;  %v1352_v44 = vld [vmem:[#allocation2 + $0x18] sm:$0xf]  ;;  %v3626_v32 = vld [vmem:[#allocation9] sm:$0xff]  ;;  %2608 = vmatpush.bf16.msrb.mxu0 %v3650_v34 }
 0x10c   : > { %v1282_v45 = vshrl.u32 %v4867_v26, 16  ;;  %v1093_v6 = vunpack.c.h.b16 %v1039_v16  ;;  %v4889_v21 = vrot.slane %v881_v55, 7  ;;  %vm4892_vm9 = vcmp.ne.s32.totalorder %v1085_v35, %v4308_v62  ;;  %v943_v55 = vld [vmem:[#allocation2 + $0x18] sm:$0xf]  ;;  %vm4918_vm0 = vmpackc.low %vm4881_vm4, %vm4876_vm1  ;;  %2521 = vmatpush.bf16.msra.mxu1 %v3626_v32  ;;  %v3590_v32 = vld [vmem:[#allocation3 + $0x4] sm:$0xf] }
 0x10d   : > { %vm4897_vm13 = vcmp.ne.s32.totalorder %v1086_v43, %v4311_v63  ;;  %v1291_v49 = vshrl.u32 %v4873_v4, 16  ;;  %v4902_v16 = vrot.slane %v890_v8, 7  ;;  %vm4905_vm2 = vcmp.ne.s32.totalorder %v1071_v27, %v4308_v62  ;;  %v3642_v27 = vld [vmem:[#allocation9 + $0x80] sm:$0xff]  ;;  %v924_v9 = vld [vmem:[#allocation2 + $0xc] sm:$0xf] }
 0x10e   : > { %vm4910_vm7 = vcmp.ne.s32.totalorder %v1072_v38, %v4311_v63  ;;  %v479_v8 = vadd.f32 %v4331_v13, %v4803_v37  ;;  %v4924_v41 = vrot.slane %v1617_v28, 4  ;;  %vm4935_vm14 = vcmp.ne.s32.totalorder %v1092_v47, %v4308_v62  ;;  %vm4949_vm11 = vmpackc.low %vm4897_vm13, %vm4892_vm9  ;;  %v1470_v28 = vld [vmem:[#allocation2 + $0x18] sm:$0xf]  ;;  %2579 = vmatpush.bf16.msrb.mxu3 %v3642_v27  ;;  %932 = vst [vmem:[#allocation3 + $0x4c] sm:$0xf] %v924_v9 }
 0x10f   : > { %v4939_v7 = vrot.slane %v1282_v45, 7  ;;  %v4943_v37 = vsel %vm4918_vm0, %v1352_v44, 0  ;;  %v5813_v12 = vmov 0  ;;  %vm4954_vm10 = vcmp.ne.s32.totalorder %v1093_v6, %v4311_v63  ;;  %v3112_v44 = vld [vmem:[#allocation3 + $0x24] sm:$0xf0]  ;;  %vm4964_vm1 = vmpackc.low %vm4910_vm7, %vm4905_vm2 }
 0x110   : > { %5808 = vst [vmem:[#allocation28_spill] sm:$0xff] %v4924_v41  ;;  %v5814_v12 = vsel %vm4949_vm11, 4294967295, %v5813_v12  ;;  %v489_v47 = vmax.f32 %v479_v8, 0.0  ;;  %v471_v45 = vadd.f32 %v4331_v13, %v470_v10  ;;  %v481_v34 = vadd.f32 %v4331_v13, %v480_v50  ;;  %v1595_v10 = vld [vmem:[#allocation2 + $0x18] sm:$0xf]  ;;  %vm4987_vm7 = vmpackc.low %vm4954_vm10, %vm4935_vm14 }
 0x111   : > { %5815 = vst [vmem:[#allocation29_spill] sm:$0xff] %v5814_v12  ;;  %v4969_v18 = vrot.slane %v1291_v49, 7  ;;  %v5820_v13 = vand.u32 7, %v4373_v39  ;;  %v485_v35 = vmax.f32 %v4848_v5, 0.0  ;;  %v750_v41 = vshrl.u32 %v4529_v57, 16 }
 0x112   : > { %v486_v43 = vmax.f32 %v471_v45, 0.0  ;;  %v490_v27 = vmax.f32 %v481_v34, 0.0  ;;  %v632_v49 = vld [vmem:[#allocation2] sm:$0x8]  ;;  %v944_v6 = vld [vmem:[#allocation2 + $0x1c] sm:$0xf]  ;;  %v3115_v34 = vor.u32 %v3590_v32, %v3112_v44  ;;  %vm5850_vm9 = vnez %v5738_v61 }
 0x113   : > { %vm4974_vm4 = vcmp.lt.s32.totalorder %v5820_v13, 7  ;;  %v5823_v39 = vmov 0  ;;  %v1118_v5 = vsel %vm4949_vm11, %v943_v55, 0  ;;  %v1406_v45 = vshll.u32 %v4943_v37, 16  ;;  %v1471_v50 = vld [vmem:[#allocation2 + $0x1c] sm:$0xf] }
 0x114   : > { %vm970_vm2 = vmpackc.low %vm4974_vm4, %vm4974_vm4  ;;  %v5824_v39 = vsel %vm4987_vm7, 4294967295, %v5823_v39  ;;  %v1410_v57 = vshrl.u32 %v4943_v37, 16  ;;  %v4997_v13 = vsel %vm4949_vm11, %v1353_v51, 0  ;;  %v3715_v11 = vpack.c.bf16 %v486_v43, %v485_v35  ;;  %2551 = vmatmul.bf16.vlgmr.msra.gmra.mxu2 %v3115_v34 }
 0x115   : > { %5825 = vst [vmem:[#allocation30_spill] sm:$0xff] %v5824_v39  ;;  %v3725_v8 = vpack.c.bf16 %v490_v27, %v489_v47  ;;  %v5826_v24 = vmov 0   ;;  %v5002_v53 = vsel %vm4930_vm8, %v1470_v28, 0  ;;  %v1604_v55 = vsel %vm4964_vm1, %v1595_v10, 0  ;;  %v1596_v28 = vld [vmem:[#allocation2 + $0x1c] sm:$0xf] }
 0x116   : > { %v978_v58 = vsel %vm970_vm2, 65537, %v5826_v24  ;;  %5827 = vst [vmem:[#allocation31_spill] sm:$0xff] %v5002_v53  ;;  %v818_v37 = vsel %vm4487_vm12, %v632_v49, 0  ;;  %v836_v51 = vshrl.u32 %v4575_v3, 16  ;;  %v1119_v47 = vsel %vm4987_vm7, %v944_v6, 0 }
 0x117   : > { %3744 = vst [vmem:[#allocation2 + $0x10] sm:$0xff] %v3715_v11   ;;  %v752_v32 = vrot.slane %v750_v41, 4  ;;  %v831_v44 = vshrl.u32 %v818_v37, 16  ;;  %v839_v35 = vshll.u32 %v4575_v3, 16  ;;  %v1042_v43 = vshrl.u32 %v978_v58, 16 }
 0x118   : > { %3746 = vst [vmem:[#allocation2 + $0x20] sm:$0xff] %v3725_v8   ;;  %v5012_v27 = vrot.slane %v836_v51, 7  ;;  %v3106_v10 = vrot.slane %v4594_v25, 11  ;;  %v5828_v46 = vrot.slane %v4697_v42, 4  ;;  %v5022_v6 = vsel %vm4839_vm15, %v1471_v50, 0 }
 0x119   : > { %5829 = vst [vmem:[#allocation32_spill] sm:$0xff] %v5022_v6  ;;  %v1640_v41 = vshll.u32 %v1604_v55, 16  ;;  %v1644_v49 = vshrl.u32 %v1604_v55, 16  ;;  %v3105_v3 = vrot.slane %v831_v44, 11  ;;  %v1172_v8 = vshll.u32 %v1118_v5, 16 }
 0x11a   : > { %v1261_v9 = vsel %vm5787_vm6, %v5828_v46, %v4833_v1  ;;  %v1176_v34 = vshrl.u32 %v1118_v5, 16  ;;  %v841_v11 = vor.u32 %v839_v35, %v5012_v27  ;;  %v1252_v25 = vsel %vm5787_vm6, %v3106_v10, %v4828_v2  ;;  %v3665_v46 = vld [vmem:[#allocation9 + $0x138] sm:$0xff] }
 0x11b   : > { %1325 = vst [vmem:[#allocation3 + $0x30] sm:$0xf] %v1261_v9  ;;  %v1182_v42 = vshll.u32 %v1119_v47, 16  ;;  %v1186_v24 = vshrl.u32 %v1119_v47, 16  ;;  %v5028_v37 = vrot.slane %v1406_v45, 5  ;;  %v1605_v1 = vsel %vm4918_vm0, %v1596_v28, 0  ;;  %2630 = vmatpush.bf16.msrb.mxu1 %v3665_v46 }
 0x11c   : > { %1324 = vst [vmem:[#allocation3 + $0xc] sm:$0xf] %v1252_v25  ;;  %v753_v50 = vor.u32 %v752_v32, %v4618_v40  ;;  %v1044_v55 = vrot.slane %v1042_v43, 7  ;;  %v1045_v51 = vshll.u32 %v978_v58, 16  ;;  %v842_v5 = vsel %vm5787_vm6, %v3105_v3, %v841_v11 }
 0x11d   : > { %5830 = vst [vmem:[#allocation33_spill] sm:$0xff] %v5028_v37  ;;  %v5035_v44 = vrot.slane %v1410_v57, 4  ;;  %v1416_v35 = vshll.u32 %v4997_v13, 16  ;;  %v5038_v2 = vrot.slane %v1640_v41, 5  ;;  %v1646_v47 = vrot.slane %v1644_v49, 4 }
 0x11e   : > { %914 = vst [vmem:[#allocation3] sm:$0xf] %v842_v5  ;;  %v5040_v45 = vrot.slane %v1172_v8, 5  ;;  %v5042_v10 = vrot.slane %v1176_v34, 4  ;;  %v1420_v28 = vshrl.u32 %v4997_v13, 16  ;;  %v1517_v40 = vshrl.u32 %v5002_v53, 16 }
 0x11f   : > { %5831 = vst [vmem:[#allocation34_spill] sm:$0xff] %v5035_v44  ;;  %v5046_v58 = vrot.slane %v1182_v42, 5  ;;  %v5048_v32 = vrot.slane %v1186_v24, 4  ;;  %v1526_v57 = vshrl.u32 %v5022_v6, 16  ;;  %v1650_v43 = vshll.u32 %v1605_v1, 16 }
 0x120   : > { %5832 = vst [vmem:[#allocation35_spill] sm:$0xff] %v5038_v2  ;;  %v636_v9 = vld [vmem:[#allocation2 + $0x10] sm:$0xf]  ;;  %v637_v41 = vld [vmem:[#allocation2 + $0x14] sm:$0xf]  ;;  %v754_v49 = vrot.slane %v753_v50, 4  ;;  %v1047_v8 = vor.u32 %v1045_v51, %v1044_v55  ;;  %v1647_v13 = vor.u32 %v1646_v47, %v5038_v2  ;;  %vm5854_vm10 = vnez %v5734_v48 }
 0x121   : > { %5833 = vst [vmem:[#allocation36_spill] sm:$0xff] %v5048_v32  ;;  %v1040_v3 = vrot.slane %v4771_v33, 4  ;;  %v5052_v34 = vrot.slane %v1416_v35, 5  ;;  %v1654_v11 = vshrl.u32 %v1605_v1, 16  ;;  %v941_v25 = vld [vmem:[#allocation2 + $0x10] sm:$0xf]  ;;  %vm5868_vm2 = vnez %v5779_v15 }
 0x122   : > { %v1049_v42 = vrot.slane %v1044_v55, 4  ;;  %v5055_v24 = vrot.slane %v1420_v28, 4  ;;  %v5057_v5 = vrot.slane %v1517_v40, 7  ;;  %v5061_v50 = vrot.slane %v1526_v57, 7  ;;  %v942_v55 = vld [vmem:[#allocation2 + $0x14] sm:$0xf] }
 0x123   : > { %5834 = vst [vmem:[#allocation37_spill] sm:$0xff] %v5052_v34  ;;  %v5063_v33 = vrot.slane %v1650_v43, 5  ;;  %v5067_v51 = vsel %vm4930_vm8, %v636_v9, 0  ;;  %v5071_v1 = vsel %vm4839_vm15, %v637_v41, 0  ;;  %v1116_v35 = vsel %vm4964_vm1, %v941_v25, 0 }
 0x124   : > { %5835 = vst [vmem:[#allocation38_spill] sm:$0xff] %v5055_v24  ;;  %v1225_v47 = vld [vmem:[#allocation2 + $0x10] sm:$0xf]  ;;  %v811_v28 = vunpack.c.l.b16 %v754_v49  ;;  %v812_v40 = vunpack.c.h.b16 %v754_v49  ;;  %v1048_v57 = vsel %vm5787_vm6, %v1040_v3, %v1047_v8  ;;  %v5077_v43 = vrot.slane %v1647_v13, 4  ;;  %v1226_v9 = vld [vmem:[#allocation2 + $0x14] sm:$0xf] }
 0x125   : > { %5836 = vst [vmem:[#allocation39_spill] sm:$0xff] %v5057_v5  ;;  %v5079_v46 = vrot.slane %v1654_v11, 4  ;;  %v5081_v44 = vunpack.c.l.b16 %v1049_v42  ;;  %v5841_v56 = vshll.u32 %v4605_v29, 16  ;;  %v863_v12 = vshrl.u32 %v5067_v51, 16  ;;  %v1577_v2 = vld [vmem:[#allocation2 + $0x10] sm:$0xf] }
 0x126   : > { %5837 = vst [vmem:[#allocation40_spill] sm:$0xff] %v5061_v50  ;;  %v872_v25 = vshrl.u32 %v5071_v1, 16  ;;  %v1117_v49 = vsel %vm4918_vm0, %v942_v55, 0  ;;  %v843_v3 = vrot.slane %v5012_v27, 4  ;;  %v1152_v8 = vshll.u32 %v1116_v35, 16  ;;  %v3688_v27 = vld [vmem:[#allocation9 + $0x1f0] sm:$0xff] }
 0x127   : > { %5838 = vst [vmem:[#allocation41_spill] sm:$0xff] %v5063_v33  ;;  %v850_v41 = vor.u32 %v5841_v56, %v4700_v0  ;;  %v5093_v13 = vsel %vm4549_vm3, %v1225_v47, 0  ;;  %v1350_v11 = vld [vmem:[#allocation2 + $0x10] sm:$0xf]  ;;  %v1100_v29 = vunpack.c.h.b16 %v1048_v57  ;;  %v5097_v56 = vsel %vm4930_vm8, %v1226_v9, 0  ;;  %v3689_v33 = vld [vmem:[#allocation9 + $0x1f8] sm:$0xff] }
 0x128   : > { %5839 = vst [vmem:[#allocation42_spill] sm:$0xff] %v5077_v43  ;;  %v1099_v43 = vunpack.c.l.b16 %v1048_v57  ;;  %vm5100_vm12 = vcmp.ne.s32.totalorder %v811_v28, %v4308_v62  ;;  %vm5105_vm0 = vcmp.ne.s32.totalorder %v812_v40, %v4311_v63  ;;  %v5109_v55 = vunpack.c.h.b16 %v1049_v42  ;;  %v1351_v57 = vld [vmem:[#allocation2 + $0x14] sm:$0xf]  ;;  %v1468_v50 = vld [vmem:[#allocation2 + $0x10] sm:$0xf]  ;;  %2717 = vmatpush.bf16.msra.mxu0 %v3689_v33 }
 0x129   : > { %5840 = vst [vmem:[#allocation43_spill] sm:$0xff] %v5079_v46  ;;  %v1156_v47 = vshrl.u32 %v1116_v35, 16  ;;  %v1166_v46 = vshrl.u32 %v1117_v49, 16  ;;  %vm1110_vm8 = vcmp.ne.s32.totalorder %v5081_v44, %v4308_v62  ;;  %v1264_v9 = vshrl.u32 %v5093_v13, 16  ;;  %v1469_v53 = vld [vmem:[#allocation2 + $0x14] sm:$0xf]  ;;  %vm5156_vm13 = vmpackc.low %vm5105_vm0, %vm5100_vm12 }
 0x12a   : > { %1585 = vst [vmem:[#allocation3 + $0x40] sm:$0xf] %v1577_v2  ;;  %v1162_v2 = vshll.u32 %v1117_v49, 16  ;;  %v1359_v40 = vsel %vm4614_vm5, %v1350_v11, 0  ;;  %v5118_v6 = vrot.slane %v863_v12, 7  ;;  %v5120_v42 = vrot.slane %v872_v25, 7 }
 0x12b   : > { %v5122_v35 = vrot.slane %v1152_v8, 5  ;;  %v1273_v49 = vshrl.u32 %v5097_v56, 16  ;;  %v1360_v38 = vsel %vm4964_vm1, %v1351_v57, 0  ;;  %v1593_v28 = vld [vmem:[#allocation2 + $0x10] sm:$0xf]  ;;  %vm5128_vm14 = vcmp.ne.s32.totalorder %v1099_v43, %v4308_v62  ;;  %v3664_v11 = vld [vmem:[#allocation9 + $0x130] sm:$0xff] }
 0x12c   : > { %vm5133_vm15 = vcmp.ne.s32.totalorder %v1100_v29, %v4311_v63  ;;  %v1474_v25 = vld [vmem:[#allocation2 + $0x28] sm:$0xf]  ;;  %v851_v8 = vsel %vm5787_vm6, %v843_v3, %v850_v41  ;;  %v5139_v20 = vrot.slane %v1156_v47, 4  ;;  %v5141_v57 = vrot.slane %v1162_v2, 5  ;;  %v1594_v34 = vld [vmem:[#allocation2 + $0x14] sm:$0xf]  ;;  %2631 = vmatpush.bf16.msrb.mxu1 %v3664_v11  ;;  %2718 = vmatpush.bf16.msra.mxu0 %v3688_v27 }
 0x12d   : > { %v5143_v24 = vrot.slane %v1166_v46, 4  ;;  %v1386_v43 = vshll.u32 %v1359_v40, 16  ;;  %v5145_v37 = vrot.slane %v1264_v9, 7  ;;  %v1390_v39 = vshrl.u32 %v1359_v40, 16  ;;  %v640_v41 = vld [vmem:[#allocation2 + $0x20] sm:$0xf]  ;;  %vm5170_vm1 = vmpackc.low %vm5133_vm15, %vm5128_vm14 }
 0x12e   : > { %v5150_v32 = vsel %vm5850_vm9, %v1468_v50, 0  ;;  %v1396_v46 = vshll.u32 %v1360_v38, 16  ;;  %v5162_v3 = vsel %vm4549_vm3, %v1469_v53, 0  ;;  %v1602_v61 = vsel %vm5854_vm10, %v1593_v28, 0  ;;  %v945_v50 = vld [vmem:[#allocation2 + $0x20] sm:$0xf] }
 0x12f   : > { %5853 = vst [vmem:[#allocation44_spill] sm:$0xff] %v5162_v3  ;;  %vm1111_vm4 = vcmp.ne.s32.totalorder %v5109_v55, %v4311_v63  ;;  %v5176_v47 = vrot.slane %v1273_v49, 7  ;;  %v1400_v53 = vshrl.u32 %v1360_v38, 16  ;;  %v1603_v48 = vsel %vm4614_vm5, %v1594_v34, 0  ;;  %v3663_v2 = vld [vmem:[#allocation9 + $0x128] sm:$0xff]  ;;  %v5865_v29 = vld [vmem:[#allocation17_spill] sm:$0xff] }
 0x130   : > { %v5181_v5 = vrot.slane %v1386_v43, 5  ;;  %v1499_v28 = vshrl.u32 %v5150_v32, 16  ;;  %v5186_v9 = vsel %vm5156_vm13, %v640_v41, 0  ;;  %v5190_v40 = vsel %vm5156_vm13, %v1474_v25, 0  ;;  %2632 = vmatpush.bf16.msrb.mxu1 %v3663_v2  ;;  %v946_v60 = vld [vmem:[#allocation2 + $0x24] sm:$0x1]  ;;  %vm5207_vm5 = vmpackc.low %vm1111_vm4, %vm1110_vm8 }
 0x131   : > { %5857 = vst [vmem:[#allocation45_spill] sm:$0xff] %v5190_v40  ;;  %v1508_v49 = vshrl.u32 %v5162_v3, 16  ;;  %v1620_v38 = vshll.u32 %v1602_v61, 16  ;;  %v1624_v12 = vshrl.u32 %v1602_v61, 16  ;;  %v5195_v36 = vsel %vm5170_vm1, %v945_v50, 0 }
 0x132   : > { %v5197_v34 = vrot.slane %v1390_v39, 4  ;;  %v5199_v11 = vrot.slane %v1396_v46, 5  ;;  %v1630_v43 = vshll.u32 %v1603_v48, 16  ;;  %v1634_v41 = vshrl.u32 %v1603_v48, 16  ;;  %v1229_v62 = vld [vmem:[#allocation2 + $0x20] sm:$0xf] }
 0x133   : > { %v5858_v25 = vmov 0  ;;  %v5211_v61 = vrot.slane %v1400_v53, 4  ;;  %v899_v50 = vshrl.u32 %v5186_v9, 16  ;;  %v5216_v27 = vrot.slane %v1499_v28, 7  ;;  %915 = vst [vmem:[#allocation3 + $0x24] sm:$0xf] %v851_v8 }
 0x134   : > { %v5859_v25 = vsel %vm5207_vm5, 4294967295, %v5858_v25  ;;  %v1192_v48 = vshll.u32 %v5195_v36, 16  ;;  %v1129_v63 = vor.u32 %v4592_v19, %v4590_v17  ;;  %vm5861_vm3 = vnez %v5692_v59  ;;  %v1230_v39 = vld [vmem:[#allocation2 + $0x24] sm:$0xf]  ;;  %v3591_v17 = vld [vmem:[#allocation3 + $0xc] sm:$0xf] }
 0x135   : > { %5860 = vst [vmem:[#allocation46_spill] sm:$0xff] %v5859_v25  ;;  %v1145_v44 = vsel %vm5861_vm3, %v4714_v52, %v4705_v23  ;;  %v5225_v55 = vrot.slane %v1508_v49, 7  ;;  %v5227_v53 = vrot.slane %v1620_v38, 5  ;;  %v5229_v2 = vrot.slane %v1624_v12, 4  ;;  %v5864_v19 = vld [vmem:[#allocation19_spill] sm:$0xff] }
 0x136   : > { %v1121_v28 = vsel %vm5207_vm5, %v946_v60, 0  ;;  %v5233_v46 = vrot.slane %v1630_v43, 5  ;;  %v5235_v8 = vrot.slane %v1634_v41, 4  ;;  %v5866_v40 = vshll.u32 %v5865_v29, 16  ;;  %v3120_v41 = vld [vmem:[#allocation3 + $0x2c] sm:$0xf0] }
 0x137   : > { %v5867_v52 = vshll.u32 %v5067_v51, 16  ;;  %v5243_v38 = vrot.slane %v899_v50, 7  ;;  %v5249_v43 = vsel %vm5868_vm2, %v1229_v62, 0  ;;  %v5251_v25 = vrot.slane %v1192_v48, 5  ;;  %1215 = vst [vmem:[#allocation3 + $0x2c] sm:$0xf] %v1145_v44 }
 0x138   : > { %5862 = vst [vmem:[#allocation47_spill] sm:$0xff] %v5233_v46  ;;  %v859_v3 = vor.u32 %v5866_v40, %v5864_v19  ;;  %v3123_v29 = vor.u32 %v3591_v17, %v3120_v41  ;;  %v1130_v40 = vrot.slane %v1129_v63, 4  ;;  %v3687_v51 = vld [vmem:[#allocation9 + $0x1e8] sm:$0xff]  ;;  %v925_v50 = vld [vmem:[#allocation2 + $0x10] sm:$0xf]  ;;  %v852_v46 = vrot.slane %v4700_v0, 4 }
 0x139   : > { %5863 = vst [vmem:[#allocation48_spill] sm:$0xff] %v5235_v8  ;;  %v868_v49 = vor.u32 %v5867_v52, %v5118_v6  ;;  %v5253_v8 = vshll.u32 %v1121_v28, 16  ;;  %v3110_v52 = vld [vmem:[#allocation3] sm:$0xf]  ;;  %v861_v12 = vrot.slane %v5864_v19, 4  ;;  %v5259_v60 = vsel %vm5156_vm13, %v1230_v39, 0  ;;  %2719 = vmatpush.bf16.msra.mxu0 %v3687_v51 }
 0x13a   : > { %v1300_v62 = vshrl.u32 %v5249_v43, 16  ;;  %2609 = vmatmul.bf16.vlgmr.msrb.gmra.mxu0 %v3123_v29  ;;  %v5869_v48 = vld [vmem:[#allocation18_spill] sm:$0xff]  ;;  %933 = vst [vmem:[#allocation3 + $0x70] sm:$0xf] %v925_v50  ;;  %v1262_v63 = vrot.slane %v4711_v30, 4  ;;  %v3662_v44 = vld [vmem:[#allocation9 + $0x120] sm:$0xff]  ;;  %v860_v0 = vsel %vm5787_vm6, %v852_v46, %v859_v3  ;;  %v1159_v46 = vor.u32 %v5139_v20, %v5122_v35 }
 0x13b   : > { %v1135_v28 = vsel %vm5861_vm3, %v1130_v40, %v5869_v48  ;;  %v3594_v17 = vld [vmem:[#allocation3 + $0x20] sm:$0xf0]  ;;  %v869_v33 = vsel %vm5787_vm6, %v861_v12, %v868_v49  ;;  %v5870_v39 = vshll.u32 %v5093_v13, 16  ;;  %v1271_v41 = vrot.slane %v5145_v37, 4  ;;  %916 = vst [vmem:[#allocation3 + $0x48] sm:$0xf] %v860_v0  ;;  %2633 = vmatpush.bf16.msrb.mxu1 %v3662_v44 }
 0x13c   : > { %1214 = vst [vmem:[#allocation3 + $0x8] sm:$0xf] %v1135_v28  ;;  %v3686_v29 = vld [vmem:[#allocation9 + $0x1e0] sm:$0xff]  ;;  %v3111_v40 = vor.u32 %v3594_v17, %v3110_v52  ;;  %v5871_v30 = vshll.u32 %v5097_v56, 16  ;;  %v5872_v48 = vld [vmem:[#allocation20_spill] sm:$0xff]  ;;  %v870_v12 = vrot.slane %v5118_v6, 4 }
 0x13d   : > { %v1269_v19 = vor.u32 %v5870_v39, %v5145_v37  ;;  %v1149_v3 = vor.u32 %v5872_v48, %v4705_v23  ;;  %v926_v49 = vld [vmem:[#allocation2 + $0x14] sm:$0xf]  ;;  %917 = vst [vmem:[#allocation3 + $0x6c] sm:$0xf] %v869_v33  ;;  %v3673_v37 = vld [vmem:[#allocation9 + $0x178] sm:$0xff]  ;;  %v5873_v51 = vshll.u32 %v5071_v1, 16  ;;  %2720 = vmatpush.bf16.msra.mxu0 %v3686_v29 }
 0x13e   : > { %v1278_v50 = vor.u32 %v5871_v30, %v5176_v47  ;;  %v879_v52 = vrot.slane %v5120_v42, 4  ;;  %2522 = vmatmul.bf16.vlgmr.msra.gmra.mxu1 %v3111_v40  ;;  %v1160_v28 = vrot.slane %v1159_v46, 4  ;;  %v927_v17 = vld [vmem:[#allocation2 + $0x18] sm:$0xf]  ;;  %v3661_v0 = vld [vmem:[#allocation9 + $0x118] sm:$0xff]  ;;  %v1309_v6 = vshrl.u32 %v5259_v60, 16  ;;  %2659 = vmatpush.bf16.msrb.mxu2 %v3673_v37 }
 0x13f   : > { %v1270_v13 = vsel %vm5787_vm6, %v1262_v63, %v1269_v19  ;;  %v877_v56 = vor.u32 %v5873_v51, %v5120_v42  ;;  %v1150_v20 = vrot.slane %v1149_v3, 4  ;;  %v5874_v63 = vshll.u32 %v4845_v54, 16  ;;  %v3599_v33 = vld [vmem:[#allocation3 + $0x4c] sm:$0xf]  ;;  %v3672_v1 = vld [vmem:[#allocation9 + $0x170] sm:$0xff]  ;;  %2634 = vmatpush.bf16.msrb.mxu1 %v3661_v0 }
 0x140   : > { %v1279_v23 = vsel %vm5787_vm6, %v1271_v41, %v1278_v50  ;;  %1326 = vst [vmem:[#allocation3 + $0x54] sm:$0xf] %v1270_v13  ;;  %v1280_v42 = vrot.slane %v5176_v47, 4  ;;  %v5875_v39 = vshll.u32 %v4867_v26, 16  ;;  %v3685_v41 = vld [vmem:[#allocation9 + $0x1d8] sm:$0xff]  ;;  %v1165_v30 = vsel %vm5861_vm3, %v1160_v28, %v5141_v57 }
 0x141   : > { %v886_v44 = vor.u32 %v5874_v63, %v4889_v21  ;;  %1327 = vst [vmem:[#allocation3 + $0x78] sm:$0xf] %v1279_v23  ;;  %v3595_v40 = vld [vmem:[#allocation3 + $0x28] sm:$0xf0]  ;;  %v1155_v54 = vsel %vm5861_vm3, %v1150_v20, %v5122_v35  ;;  %v1289_v29 = vrot.slane %v4939_v7, 4  ;;  %v5876_v47 = vshll.u32 %v4873_v4, 16  ;;  %2721 = vmatpush.bf16.msra.mxu0 %v3685_v41 }
 0x142   : > { %v1287_v19 = vor.u32 %v5875_v39, %v4939_v7  ;;  %934 = vst [vmem:[#allocation3 + $0x94] sm:$0xf] %v926_v49  ;;  %v5877_v26 = vshrl.u32 %v5195_v36, 16  ;;  %v3148_v3 = vld [vmem:[#allocation3 + $0x6c] sm:$0xf0]  ;;  %v878_v35 = vsel %vm5787_vm6, %v870_v12, %v877_v56  ;;  %v1169_v46 = vor.u32 %v5143_v24, %v5141_v57  ;;  %2660 = vmatpush.bf16.msrb.mxu2 %v3672_v1  ;;  %v3671_v57 = vld [vmem:[#allocation9 + $0x168] sm:$0xff] }
 0x143   : > { %v1296_v50 = vor.u32 %v5876_v47, %v4969_v18  ;;  %1216 = vst [vmem:[#allocation3 + $0x50] sm:$0xf] %v1155_v54  ;;  %v1179_v7 = vor.u32 %v5042_v10, %v5040_v45  ;;  %v5318_v49 = vrot.slane %v1300_v62, 7  ;;  %v1303_v4 = vshll.u32 %v5249_v43, 16  ;;  %v3118_v13 = vld [vmem:[#allocation3 + $0x8] sm:$0xf] }
 0x144   : > { %v5310_v48 = vrot.slane %v5877_v26, 4  ;;  %v3151_v36 = vor.u32 %v3599_v33, %v3148_v3  ;;  %1217 = vst [vmem:[#allocation3 + $0x74] sm:$0xf] %v1165_v30  ;;  %v887_v37 = vsel %vm5787_vm6, %v879_v52, %v886_v44  ;;  %v1354_v51 = vld [vmem:[#allocation2 + $0x20] sm:$0xf]  ;;  %v3119_v23 = vor.u32 %v3595_v40, %v3118_v13  ;;  %v3681_v44 = vld [vmem:[#allocation9 + $0x1b8] sm:$0xff] }
 0x145   : > { %935 = vst [vmem:[#allocation3 + $0xb8] sm:$0xf] %v927_v17  ;;  %v1288_v24 = vsel %vm5787_vm6, %v1280_v42, %v1287_v19  ;;  %v1170_v10 = vrot.slane %v1169_v46, 4  ;;  %v1180_v62 = vrot.slane %v1179_v7, 4  ;;  %v1311_v12 = vrot.slane %v1309_v6, 7  ;;  %v3660_v39 = vld [vmem:[#allocation9 + $0x110] sm:$0xff]  ;;  %2688 = vmatpush.bf16.msra.mxu3 %v3681_v44 }
 0x146   : > { %v1312_v43 = vshll.u32 %v5259_v60, 16  ;;  %v1355_v56 = vld [vmem:[#allocation2 + $0x24] sm:$0xf]  ;;  %2556 = vmatmul.bf16.gmra.mxu2 %v3151_v36  ;;  %918 = vst [vmem:[#allocation3 + $0x90] sm:$0xf] %v878_v35  ;;  %v1297_v52 = vsel %vm5787_vm6, %v1289_v29, %v1296_v50  ;;  %v888_v20 = vrot.slane %v4889_v21, 4  ;;  %v1627_v28 = vor.u32 %v5229_v2, %v5227_v53  ;;  %2580 = vmatmul.bf16.vlgmr.msrb.gmra.mxu3 %v3119_v23 }
 0x147   : > { %v5331_v17 = vld [vmem:[#allocation3 + $0x68] sm:$0xf0]  ;;  %v3600_v63 = vld [vmem:[#allocation3 + $0x54] sm:$0xf]  ;;  %919 = vst [vmem:[#allocation3 + $0xb4] sm:$0xf] %v887_v37  ;;  %v1175_v60 = vsel %vm5861_vm3, %v1170_v10, %v5040_v45  ;;  %v1185_v2 = vsel %vm5861_vm3, %v1180_v62, %v5046_v58  ;;  %2661 = vmatpush.bf16.msrb.mxu2 %v3671_v57  ;;  %v1305_v47 = vor.u32 %v1303_v4, %v5318_v49 }
 0x148   : > { %v928_v0 = vld [vmem:[#allocation2 + $0x1c] sm:$0xf]  ;;  %v5878_v6 = vshll.u32 %v4852_v22, 16  ;;  %v897_v21 = vrot.slane %v4902_v16, 4  ;;  %v1472_v1 = vld [vmem:[#allocation2 + $0x20] sm:$0xf]  ;;  %v1199_v50 = vor.u32 %v5310_v48, %v5251_v25  ;;  %2635 = vmatpush.bf16.msrb.mxu1 %v3660_v39  ;;  %v1314_v26 = vor.u32 %v1312_v43, %v1311_v12 }
 0x149   : > { %v3156_v42 = vld [vmem:[#allocation3 + $0x74] sm:$0xf0]  ;;  %1328 = vst [vmem:[#allocation3 + $0x9c] sm:$0xf] %v1288_v24  ;;  %v5879_v19 = vshll.u32 %v5186_v9, 16  ;;  %v1298_v41 = vrot.slane %v4969_v18, 4  ;;  %v1393_v10 = vor.u32 %v5197_v34, %v5181_v5 }
 0x14a   : > { %v895_v33 = vor.u32 %v5878_v6, %v4902_v16  ;;  %v5880_v40 = vld [vmem:[#allocation36_spill] sm:$0xff]  ;;  %v3159_v54 = vor.u32 %v3600_v63, %v3156_v42  ;;  %1329 = vst [vmem:[#allocation3 + $0xc0] sm:$0xf] %v1297_v52  ;;  %v3670_v16 = vld [vmem:[#allocation9 + $0x160] sm:$0xff]  ;;  %v3680_v30 = vld [vmem:[#allocation9 + $0x1b0] sm:$0xff]  ;;  %v1204_v9 = vrot.slane %v5253_v8, 5 }
 0x14b   : > { %v904_v45 = vor.u32 %v5879_v19, %v5243_v38  ;;  %v1189_v22 = vor.u32 %v5880_v40, %v5046_v58  ;;  %v3684_v29 = vld [vmem:[#allocation9 + $0x1d0] sm:$0xff]  ;;  %v5355_v18 = vsel %vm4987_vm7, %v1354_v51, 0  ;;  %1218 = vst [vmem:[#allocation3 + $0x98] sm:$0xf] %v1175_v60  ;;  %v5359_v3 = vsel %vm5170_vm1, %v1355_v56, 0  ;;  %v5882_v51 = vld [vmem:[#allocation24_spill] sm:$0xff]  ;;  %2662 = vmatpush.bf16.msrb.mxu2 %v3670_v16  ;;  %2689 = vmatpush.bf16.msra.mxu3 %v3680_v30 }
 0x14c   : > { %v929_v58 = vld [vmem:[#allocation2 + $0x20] sm:$0xf]  ;;  %v3146_v35 = vld [vmem:[#allocation3 + $0x48] sm:$0xf]  ;;  %1219 = vst [vmem:[#allocation3 + $0xbc] sm:$0xf] %v1185_v2  ;;  %2722 = vmatpush.bf16.msra.mxu0 %v3684_v29  ;;  %v896_v48 = vsel %vm5787_vm6, %v888_v20, %v895_v33  ;;  %vm5883_vm12 = vnez %v5882_v51  ;;  %v1306_v57 = vsel %vm5787_vm6, %v1298_v41, %v1305_v47 }
 0x14d   : > { %v1307_v8 = vrot.slane %v5318_v49, 4  ;;  %v3147_v46 = vor.u32 %v5331_v17, %v3146_v35  ;;  %2614 = vmatmul.bf16.gmra.mxu0 %v3159_v54  ;;  %936 = vst [vmem:[#allocation3 + $0xdc] sm:$0xf] %v928_v0  ;;  %v905_v7 = vsel %vm5787_vm6, %v897_v21, %v904_v45  ;;  %v1190_v4 = vrot.slane %v1189_v22, 4  ;;  %v1473_v37 = vld [vmem:[#allocation2 + $0x24] sm:$0xf] }
 0x14e   : > { %v1200_v13 = vrot.slane %v1199_v50, 4  ;;  %v5367_v36 = vrot.slane %v1627_v28, 4  ;;  %v5371_v23 = vsel %vm5883_vm12, %v1472_v1, 0  ;;  %937 = vst [vmem:[#allocation3 + $0x100] sm:$0xf] %v929_v58  ;;  %v3669_v49 = vld [vmem:[#allocation9 + $0x158] sm:$0xff]  ;;  %v1403_v0 = vor.u32 %v5211_v61, %v5199_v11 }
 0x14f   : > { %v3679_v24 = vld [vmem:[#allocation9 + $0x1a8] sm:$0xff]  ;;  %v1426_v62 = vshll.u32 %v5355_v18, 16  ;;  %v1430_v12 = vshrl.u32 %v5355_v18, 16  ;;  %v1436_v43 = vshll.u32 %v5359_v3, 16  ;;  %920 = vst [vmem:[#allocation3 + $0xd8] sm:$0xf] %v896_v48  ;;  %v1315_v56 = vsel %vm5787_vm6, %v1307_v8, %v1314_v26  ;;  %2527 = vmatmul.bf16.gmra.mxu1 %v3147_v46  ;;  %2663 = vmatpush.bf16.msrb.mxu2 %v3669_v49 }
 0x150   : > { %v5884_v52 = vld [vmem:[#allocation27_spill] sm:$0xff]  ;;  %v5885_v20 = vld [vmem:[#allocation22_spill] sm:$0xff]  ;;  %v1440_v63 = vshrl.u32 %v5359_v3, 16  ;;  %921 = vst [vmem:[#allocation3 + $0xfc] sm:$0xf] %v905_v7  ;;  %v1195_v34 = vsel %vm5861_vm3, %v1190_v4, %v5251_v25  ;;  %v5887_v6 = vshll.u32 %v5150_v32, 16  ;;  %v1205_v2 = vsel %vm5861_vm3, %v1200_v13, %v1204_v9  ;;  %2690 = vmatpush.bf16.msra.mxu3 %v3679_v24 }
 0x151   : > { %v5886_v28 = vshll.u32 %v5885_v20, 16  ;;  %v3608_v60 = vld [vmem:[#allocation3 + $0x94] sm:$0xf]  ;;  %1330 = vst [vmem:[#allocation3 + $0xe4] sm:$0xf] %v1306_v57  ;;  %v3659_v1 = vld [vmem:[#allocation9 + $0x108] sm:$0xff] }
 0x152   : > { %v3668_v44 = vld [vmem:[#allocation9 + $0x150] sm:$0xff]  ;;  %v1504_v33 = vor.u32 %v5887_v6, %v5216_v27  ;;  %v3683_v42 = vld [vmem:[#allocation9 + $0x1c8] sm:$0xff]  ;;  %v3184_v39 = vld [vmem:[#allocation3 + $0xb4] sm:$0xf0]  ;;  %1331 = vst [vmem:[#allocation3 + $0x108] sm:$0xf] %v1315_v56  ;;  %2636 = vmatpush.bf16.msrb.mxu1 %v3659_v1 }
 0x153   : > { %v1495_v17 = vor.u32 %v5886_v28, %v5884_v52  ;;  %v3604_v21 = vld [vmem:[#allocation3 + $0x70] sm:$0xf0]  ;;  %v3678_v19 = vld [vmem:[#allocation9 + $0x1a0] sm:$0xff]  ;;  %v1394_v32 = vrot.slane %v1393_v10, 4  ;;  %v5402_v41 = vsel %vm5868_vm2, %v1473_v37, 0  ;;  %v1535_v40 = vshrl.u32 %v5371_v23, 16  ;;  %2723 = vmatpush.bf16.msra.mxu0 %v3683_v42  ;;  %2664 = vmatpush.bf16.msrb.mxu2 %v3668_v44 }
 0x154   : > { %v5888_v25 = vld [vmem:[#allocation21_spill] sm:$0xff]  ;;  %v3154_v22 = vld [vmem:[#allocation3 + $0x50] sm:$0xf]  ;;  %1220 = vst [vmem:[#allocation3 + $0xe0] sm:$0xf] %v1195_v34  ;;  %v5890_v54 = vld [vmem:[#allocation26_spill] sm:$0xff]  ;;  %v3187_v26 = vor.u32 %v3608_v60, %v3184_v39  ;;  %2691 = vmatpush.bf16.msra.mxu3 %v3678_v19 }
 0x155   : > { %v5889_v45 = vld [vmem:[#allocation25_spill] sm:$0xff]  ;;  %v1389_v16 = vsel %vm5861_vm3, %v5890_v54, %v5181_v5  ;;  %v1538_v30 = vshll.u32 %v5371_v23, 16  ;;  %v3155_v29 = vor.u32 %v3604_v21, %v3154_v22  ;;  %1221 = vst [vmem:[#allocation3 + $0x104] sm:$0xf] %v1205_v2  ;;  %v5891_v47 = vld [vmem:[#allocation23_spill] sm:$0xff]  ;;  %v1404_v9 = vrot.slane %v1403_v0, 4 }
 0x156   : > { %v1379_v61 = vsel %vm5861_vm3, %v5889_v45, %v5888_v25  ;;  %v5892_v50 = vrot.slane %v5891_v47, 11  ;;  %v5414_v18 = vrot.slane %v1426_v62, 5  ;;  %v5416_v58 = vrot.slane %v1430_v12, 4  ;;  %v1597_v48 = vld [vmem:[#allocation2 + $0x20] sm:$0xf]  ;;  %v3667_v46 = vld [vmem:[#allocation9 + $0x148] sm:$0xff]  ;;  %2561 = vmatmul.bf16.gmra.mxu2 %v3187_v26 }
 0x157   : > { %1458 = vst [vmem:[#allocation3 + $0x14] sm:$0xf] %v1379_v61  ;;  %v5893_v3 = vrot.slane %v5884_v52, 4  ;;  %v5422_v35 = vrot.slane %v1436_v43, 5  ;;  %v3609_v8 = vld [vmem:[#allocation3 + $0x9c] sm:$0xf]  ;;  %v1399_v7 = vsel %vm5861_vm3, %v1394_v32, %v5199_v11  ;;  %2585 = vmatmul.bf16.gmra.mxu3 %v3155_v29  ;;  %2665 = vmatpush.bf16.msrb.mxu2 %v3667_v46 }
 0x158   : > { %v1496_v15 = vsel %vm5787_vm6, %v5892_v50, %v1495_v17  ;;  %1459 = vst [vmem:[#allocation3 + $0x38] sm:$0xf] %v1389_v16  ;;  %v3192_v4 = vld [vmem:[#allocation3 + $0xbc] sm:$0xf0]  ;;  %v1544_v49 = vshrl.u32 %v5402_v41, 16  ;;  %v3677_v24 = vld [vmem:[#allocation9 + $0x198] sm:$0xff] }
 0x159   : > { %v1505_v5 = vsel %vm5787_vm6, %v5893_v3, %v1504_v33  ;;  %1568 = vst [vmem:[#allocation3 + $0x18] sm:$0xf] %v1496_v15  ;;  %v5894_v13 = vld [vmem:[#allocation33_spill] sm:$0xff]  ;;  %v5431_v10 = vrot.slane %v1440_v63, 4  ;;  %v1598_v62 = vld [vmem:[#allocation2 + $0x24] sm:$0xf]  ;;  %2692 = vmatpush.bf16.msra.mxu3 %v3677_v24  ;;  %v3195_v42 = vor.u32 %v3609_v8, %v3192_v4 }
 0x15a   : > { %v1409_v37 = vsel %vm5861_vm3, %v1404_v9, %v5894_v13  ;;  %v1334_v51 = vld [vmem:[#allocation2 + $0x10] sm:$0xf]  ;;  %1569 = vst [vmem:[#allocation3 + $0x3c] sm:$0xf] %v1505_v5  ;;  %v1335_v57 = vld [vmem:[#allocation2 + $0x14] sm:$0xf] }
 0x15b   : > { %v3658_v12 = vld [vmem:[#allocation9 + $0x100] sm:$0xff]  ;;  %1460 = vst [vmem:[#allocation3 + $0x5c] sm:$0xf] %v1399_v7  ;;  %v5895_v43 = vld [vmem:[#allocation44_spill] sm:$0xff]  ;;  %v5897_v20 = vld [vmem:[#allocation34_spill] sm:$0xff]  ;;  %v5438_v17 = vrot.slane %v1535_v40, 7 }
 0x15c   : > { %v1578_v11 = vld [vmem:[#allocation2 + $0x14] sm:$0xf]  ;;  %v5896_v56 = vshll.u32 %v5895_v43, 16  ;;  %v1413_v28 = vor.u32 %v5897_v20, %v5894_v13  ;;  %v3676_v44 = vld [vmem:[#allocation9 + $0x190] sm:$0xff]  ;;  %1461 = vst [vmem:[#allocation3 + $0x80] sm:$0xf] %v1409_v37  ;;  %2637 = vmatpush.bf16.msrb.mxu1 %v3658_v12  ;;  %v1433_v12 = vor.u32 %v5416_v58, %v5414_v18 }
 0x15d   : > { %v3666_v60 = vld [vmem:[#allocation9 + $0x140] sm:$0xff]  ;;  %v5899_v0 = vld [vmem:[#allocation38_spill] sm:$0xff]  ;;  %v5444_v21 = vsel %vm4949_vm11, %v1597_v48, 0  ;;  %v3182_v1 = vld [vmem:[#allocation3 + $0x90] sm:$0xf]  ;;  %v1506_v2 = vrot.slane %v5216_v27, 4  ;;  %2619 = vmatmul.bf16.gmra.mxu0 %v3195_v42  ;;  %2693 = vmatpush.bf16.msra.mxu3 %v3676_v44 }
 0x15e   : > { %v1513_v52 = vor.u32 %v5896_v56, %v5225_v55  ;;  %v3682_v34 = vld [vmem:[#allocation9 + $0x1c0] sm:$0xff]  ;;  %1342 = vst [vmem:[#allocation3 + $0x58] sm:$0xf] %v1334_v51  ;;  %v5901_v39 = vld [vmem:[#allocation39_spill] sm:$0xff]  ;;  %v1579_v32 = vld [vmem:[#allocation2 + $0x18] sm:$0xf]  ;;  %2666 = vmatpush.bf16.msrb.mxu2 %v3666_v60 }
 0x15f   : > { %v5898_v63 = vld [vmem:[#allocation37_spill] sm:$0xff]  ;;  %v5902_v19 = vld [vmem:[#allocation31_spill] sm:$0xff]  ;;  %2724 = vmatpush.bf16.msra.mxu0 %v3682_v34  ;;  %1343 = vst [vmem:[#allocation3 + $0x7c] sm:$0xf] %v1335_v57  ;;  %v1547_v40 = vshll.u32 %v5402_v41, 16  ;;  %v1515_v54 = vrot.slane %v5225_v55, 4 }
 0x160   : > { %v1423_v6 = vor.u32 %v5899_v0, %v5898_v63  ;;  %v5903_v25 = vshll.u32 %v5902_v19, 16  ;;  %v3612_v61 = vld [vmem:[#allocation3 + $0xb0] sm:$0xf0]  ;;  %1586 = vst [vmem:[#allocation3 + $0x64] sm:$0xf] %v1578_v11  ;;  %v1514_v22 = vsel %vm5787_vm6, %v1506_v2, %v1513_v52  ;;  %v1414_v16 = vrot.slane %v1413_v28, 4 }
 0x161   : > { %v5454_v29 = vrot.slane %v1544_v49, 7  ;;  %v5458_v27 = vsel %vm4987_vm7, %v1598_v62, 0  ;;  %v3675_v47 = vld [vmem:[#allocation9 + $0x188] sm:$0xff]  ;;  %1587 = vst [vmem:[#allocation3 + $0x88] sm:$0xf] %v1579_v32  ;;  %v1660_v15 = vshll.u32 %v5444_v21, 16  ;;  %v3183_v9 = vor.u32 %v3612_v61, %v3182_v1 }
 0x162   : > { %v1522_v45 = vor.u32 %v5903_v25, %v5901_v39  ;;  %v1424_v50 = vrot.slane %v1423_v6, 4  ;;  %1570 = vst [vmem:[#allocation3 + $0x60] sm:$0xf] %v1514_v22  ;;  %v1419_v55 = vsel %vm5861_vm3, %v1414_v16, %v5898_v63  ;;  %v1664_v38 = vshrl.u32 %v5444_v21, 16  ;;  %v3617_v3 = vld [vmem:[#allocation3 + $0xdc] sm:$0xf]  ;;  %2694 = vmatpush.bf16.msra.mxu3 %v3675_v47 }
 0x163   : > { %v3220_v5 = vld [vmem:[#allocation3 + $0xfc] sm:$0xf0]  ;;  %v1336_v8 = vld [vmem:[#allocation2 + $0x18] sm:$0xf]  ;;  %v1524_v46 = vrot.slane %v5901_v39, 4  ;;  %v5904_v7 = vld [vmem:[#allocation40_spill] sm:$0xff]  ;;  %2532 = vmatmul.bf16.gmra.mxu1 %v3183_v9  ;;  %v1540_v62 = vor.u32 %v1538_v30, %v5438_v17  ;;  %v1443_v52 = vor.u32 %v5431_v10, %v5422_v35 }
 0x164   : > { %v1523_v26 = vsel %vm5787_vm6, %v1515_v54, %v1522_v45  ;;  %v1429_v48 = vsel %vm5861_vm3, %v1424_v50, %v5414_v18  ;;  %v5905_v4 = vld [vmem:[#allocation32_spill] sm:$0xff]  ;;  %1462 = vst [vmem:[#allocation3 + $0xa4] sm:$0xf] %v1419_v55  ;;  %v1337_v24 = vld [vmem:[#allocation2 + $0x1c] sm:$0xf]  ;;  %v1533_v57 = vrot.slane %v5904_v7, 4  ;;  %v3223_v63 = vor.u32 %v3617_v3, %v3220_v5 }
 0x165   : > { %1571 = vst [vmem:[#allocation3 + $0x84] sm:$0xf] %v1523_v26  ;;  %v5906_v13 = vshll.u32 %v5905_v4, 16  ;;  %v3190_v51 = vld [vmem:[#allocation3 + $0x98] sm:$0xf]  ;;  %v1670_v11 = vshll.u32 %v5458_v27, 16 }
 0x166   : > { %v3697_v49 = vld [vmem:[#allocation9 + $0x238] sm:$0xff]  ;;  %v3674_v43 = vld [vmem:[#allocation9 + $0x180] sm:$0xff]  ;;  %1463 = vst [vmem:[#allocation3 + $0xc8] sm:$0xf] %v1429_v48  ;;  %v1580_v56 = vld [vmem:[#allocation2 + $0x1c] sm:$0xf]  ;;  %v1541_v10 = vsel %vm5787_vm6, %v1533_v57, %v1540_v62  ;;  %2566 = vmatmul.bf16.gmra.mxu2 %v3223_v63 }
 0x167   : > { %v1531_v37 = vor.u32 %v5906_v13, %v5904_v7  ;;  %v3613_v20 = vld [vmem:[#allocation3 + $0xb8] sm:$0xf0]  ;;  %2746 = vmatpush.bf16.msrb.mxu0 %v3697_v49  ;;  %3758 = vmatpush.bf16.msra.mxu1 %v3697_v49  ;;  %1344 = vst [vmem:[#allocation3 + $0xa0] sm:$0xf] %v1336_v8  ;;  %v1581_v28 = vld [vmem:[#allocation2 + $0x20] sm:$0xf] }
 0x168   : > { %v5907_v60 = vld [vmem:[#allocation47_spill] sm:$0xff]  ;;  %v5908_v23 = vld [vmem:[#allocation48_spill] sm:$0xff]  ;;  %v5485_v44 = vrot.slane %v1660_v15, 5  ;;  %v1674_v18 = vshrl.u32 %v5458_v27, 16  ;;  %1345 = vst [vmem:[#allocation3 + $0xc4] sm:$0xf] %v1337_v24  ;;  %v3191_v1 = vor.u32 %v3613_v20, %v3190_v51  ;;  %2695 = vmatpush.bf16.msra.mxu3 %v3674_v43 }
 0x169   : > { %v1637_v30 = vor.u32 %v5908_v23, %v5907_v60  ;;  %v1532_v58 = vsel %vm5787_vm6, %v1524_v46, %v1531_v37  ;;  %v1356_v34 = vld [vmem:[#allocation2 + $0x28] sm:$0x1]  ;;  %1588 = vst [vmem:[#allocation3 + $0xac] sm:$0xf] %v1580_v56  ;;  %v1434_v33 = vrot.slane %v1433_v12, 4  ;;  %v1666_v21 = vrot.slane %v1664_v38, 4 }
 0x16a   : > { %v1365_v6 = vsel %vm5207_vm5, %v1356_v34, 0  ;;  %1589 = vst [vmem:[#allocation3 + $0xd0] sm:$0xf] %v1581_v28  ;;  %v1444_v42 = vrot.slane %v1443_v52, 4  ;;  %v3618_v39 = vld [vmem:[#allocation3 + $0xe4] sm:$0xf]  ;;  %2590 = vmatmul.bf16.gmra.mxu3 %v3191_v1  ;;  %v1633_v13 = vsel %vm5861_vm3, %v5367_v36, %v5907_v60 }
 0x16b   : > { %v1446_v2 = vshll.u32 %v1365_v6, 16  ;;  %1572 = vst [vmem:[#allocation3 + $0xa8] sm:$0xf] %v1532_v58  ;;  %v1439_v19 = vsel %vm5861_vm3, %v1434_v33, %v5422_v35  ;;  %v1338_v25 = vld [vmem:[#allocation2 + $0x20] sm:$0xf]  ;;  %v1638_v22 = vrot.slane %v1637_v30, 4  ;;  %v1549_v35 = vor.u32 %v1547_v40, %v5454_v29 }
 0x16c   : > { %v3228_v45 = vld [vmem:[#allocation3 + $0x104] sm:$0xf0]  ;;  %v3696_v61 = vld [vmem:[#allocation9 + $0x230] sm:$0xff]  ;;  %1573 = vst [vmem:[#allocation3 + $0xcc] sm:$0xf] %v1541_v10  ;;  %v1676_v54 = vrot.slane %v1674_v18, 4  ;;  %v1667_v3 = vor.u32 %v1666_v21, %v5485_v44 }
 0x16d   : > { %v1448_v32 = vrot.slane %v1446_v2, 5  ;;  %1464 = vst [vmem:[#allocation3 + $0xec] sm:$0xf] %v1439_v19  ;;  %v1339_v16 = vld [vmem:[#allocation2 + $0x24] sm:$0xf]  ;;  %2747 = vmatpush.bf16.msrb.mxu0 %v3696_v61  ;;  %3759 = vmatpush.bf16.msra.mxu1 %v3696_v61  ;;  %v5910_v50 = vld [vmem:[#allocation41_spill] sm:$0xff]  ;;  %v3231_v55 = vor.u32 %v3618_v39, %v3228_v45 }
 0x16e   : > { %1346 = vst [vmem:[#allocation3 + $0xe8] sm:$0xf] %v1338_v25  ;;  %v1582_v47 = vld [vmem:[#allocation2 + $0x24] sm:$0xf]  ;;  %v3218_v26 = vld [vmem:[#allocation3 + $0xd8] sm:$0xf] }
 0x16f   : > { %v1449_v27 = vsel %vm5861_vm3, %v1444_v42, %v1448_v32  ;;  %v5911_v15 = vld [vmem:[#allocation43_spill] sm:$0xff]  ;;  %v1583_v38 = vld [vmem:[#allocation2 + $0x28] sm:$0xf]  ;;  %v1672_v5 = vrot.slane %v1670_v11, 5  ;;  %v3621_v48 = vld [vmem:[#allocation3 + $0xf8] sm:$0xf0]  ;;  %2624 = vmatmul.bf16.gmra.mxu0 %v3231_v55 }
 0x170   : > { %v1657_v9 = vor.u32 %v5911_v15, %v5910_v50  ;;  %1465 = vst [vmem:[#allocation3 + $0x110] sm:$0xf] %v1449_v27  ;;  %v1542_v8 = vrot.slane %v5438_v17, 4  ;;  %v5912_v46 = vld [vmem:[#allocation45_spill] sm:$0xff]  ;;  %v5913_v40 = vld [vmem:[#allocation28_spill] sm:$0xff]  ;;  %v5914_v37 = vld [vmem:[#allocation35_spill] sm:$0xff]  ;;  %v3219_v57 = vor.u32 %v3621_v48, %v3218_v26 }
 0x171   : > { %1347 = vst [vmem:[#allocation3 + $0x10c] sm:$0xf] %v1339_v16  ;;  %v1553_v7 = vshrl.u32 %v5912_v46, 16  ;;  %v1556_v41 = vshll.u32 %v5912_v46, 16  ;;  %v1623_v4 = vsel %vm5861_vm3, %v5913_v40, %v5227_v53  ;;  %v1643_v51 = vsel %vm5861_vm3, %v1638_v22, %v5914_v37  ;;  %v5915_v11 = vld [vmem:[#allocation42_spill] sm:$0xff]  ;;  %v3694_v39 = vld [vmem:[#allocation9 + $0x220] sm:$0xff] }
 0x172   : > { %1590 = vst [vmem:[#allocation3 + $0xf4] sm:$0xf] %v1582_v47  ;;  %v1550_v17 = vsel %vm5787_vm6, %v1542_v8, %v1549_v35  ;;  %v1658_v49 = vrot.slane %v1657_v9, 4  ;;  %v1677_v24 = vor.u32 %v1676_v54, %v1672_v5  ;;  %v1551_v62 = vrot.slane %v5454_v29, 4  ;;  %v1599_v43 = vld [vmem:[#allocation2 + $0x28] sm:$0xf] }
 0x173   : > { %1591 = vst [vmem:[#allocation3 + $0x118] sm:$0xf] %v1583_v38  ;;  %v1555_v12 = vrot.slane %v1553_v7, 7  ;;  %v1668_v53 = vrot.slane %v1667_v3, 4  ;;  %v1653_v36 = vsel %vm5861_vm3, %v5915_v11, %v5910_v50  ;;  %2537 = vmatmul.bf16.gmra.mxu1 %v3219_v57  ;;  %v3226_v56 = vld [vmem:[#allocation3 + $0xe0] sm:$0xf] }
 0x174   : > { %1574 = vst [vmem:[#allocation3 + $0xf0] sm:$0xf] %v1550_v17  ;;  %v3128_v52 = vld [vmem:[#allocation3 + $0x34] sm:$0xf0]  ;;  %v3695_v20 = vld [vmem:[#allocation9 + $0x228] sm:$0xff]  ;;  %v1608_v60 = vsel %vm5170_vm1, %v1599_v43, 0  ;;  %v1663_v29 = vsel %vm5861_vm3, %v1658_v49, %v5485_v44 }
 0x175   : > { %1702 = vst [vmem:[#allocation3 + $0x20] sm:$0xf] %v1623_v4  ;;  %v1558_v28 = vor.u32 %v1556_v41, %v1555_v12  ;;  %v1600_v23 = vld [vmem:[#allocation2 + $0x2c] sm:$0x1]  ;;  %v1678_v30 = vrot.slane %v1677_v24, 4  ;;  %2748 = vmatpush.bf16.msrb.mxu0 %v3695_v20  ;;  %3760 = vmatpush.bf16.msra.mxu1 %v3695_v20  ;;  %v1673_v34 = vsel %vm5861_vm3, %v1668_v53, %v1672_v5  ;;  %v1680_v63 = vshll.u32 %v1608_v60, 16 }
 0x176   : > { %1703 = vst [vmem:[#allocation3 + $0x44] sm:$0xf] %v1633_v13  ;;  %v3622_v18 = vld [vmem:[#allocation3 + $0x100] sm:$0xf0]  ;;  %v1609_v14 = vsel %vm5207_vm5, %v1600_v23, 0  ;;  %v1684_v6 = vshrl.u32 %v1608_v60, 16 }
 0x177   : > { %1704 = vst [vmem:[#allocation3 + $0x68] sm:$0xf] %v1643_v51  ;;  %v1559_v58 = vsel %vm5787_vm6, %v1551_v62, %v1558_v28  ;;  %v3592_v10 = vld [vmem:[#allocation3 + $0x14] sm:$0xf]  ;;  %v1690_v44 = vshll.u32 %v1609_v14, 16  ;;  %v1682_v21 = vrot.slane %v1680_v63, 5  ;;  %v3227_v1 = vor.u32 %v3622_v18, %v3226_v56 }
 0x178   : > { %1705 = vst [vmem:[#allocation3 + $0x8c] sm:$0xf] %v1653_v36  ;;  %v3131_v33 = vor.u32 %v3592_v10, %v3128_v52  ;;  %v1686_v42 = vrot.slane %v1684_v6, 4  ;;  %v3136_v2 = vld [vmem:[#allocation3 + $0x3c] sm:$0xf0]  ;;  %v3693_v27 = vld [vmem:[#allocation9 + $0x218] sm:$0xff] }
 0x179   : > { %1575 = vst [vmem:[#allocation3 + $0x114] sm:$0xf] %v1559_v58  ;;  %v1683_v31 = vsel %vm5861_vm3, %v1678_v30, %v1682_v21  ;;  %v1692_v19 = vrot.slane %v1690_v44, 5  ;;  %v3593_v25 = vld [vmem:[#allocation3 + $0x1c] sm:$0xf]  ;;  %2749 = vmatpush.bf16.msrb.mxu0 %v3694_v39  ;;  %3761 = vmatpush.bf16.msra.mxu1 %v3694_v39  ;;  %v3692_v3 = vld [vmem:[#allocation9 + $0x210] sm:$0xff] }
 0x17a   : > { %1706 = vst [vmem:[#allocation3 + $0xb0] sm:$0xf] %v1663_v29  ;;  %2667 = vmatmul.bf16.vlgmr.msrb.gmra.mxu2 %v3131_v33  ;;  %2595 = vmatmul.bf16.gmra.mxu3 %v3227_v1  ;;  %v1687_v0 = vor.u32 %v1686_v42, %v1682_v21  ;;  %v3139_v61 = vor.u32 %v3593_v25, %v3136_v2  ;;  %v3126_v32 = vld [vmem:[#allocation3 + $0x10] sm:$0xf]  ;;  %v3596_v22 = vld [vmem:[#allocation3 + $0x30] sm:$0xf0] }
 0x17b   : > { %1707 = vst [vmem:[#allocation3 + $0xd4] sm:$0xf] %v1673_v34  ;;  %v3127_v16 = vor.u32 %v3596_v22, %v3126_v32  ;;  %v3601_v47 = vld [vmem:[#allocation3 + $0x5c] sm:$0xf]  ;;  %v3164_v35 = vld [vmem:[#allocation3 + $0x7c] sm:$0xf0] }
 0x17c   : > { %1708 = vst [vmem:[#allocation3 + $0xf8] sm:$0xf] %v1683_v31  ;;  %v1688_v45 = vrot.slane %v1687_v0, 4  ;;  %v3597_v50 = vld [vmem:[#allocation3 + $0x38] sm:$0xf0]  ;;  %v3167_v9 = vor.u32 %v3601_v47, %v3164_v35  ;;  %v3691_v46 = vld [vmem:[#allocation9 + $0x208] sm:$0xff] }
 0x17d   : > { %2750 = vmatpush.bf16.msrb.mxu0 %v3693_v27  ;;  %3762 = vmatpush.bf16.msra.mxu1 %v3693_v27  ;;  %v3134_v15 = vld [vmem:[#allocation3 + $0x18] sm:$0xf]  ;;  %v3602_v55 = vld [vmem:[#allocation3 + $0x64] sm:$0xf]  ;;  %v3172_v38 = vld [vmem:[#allocation3 + $0x84] sm:$0xf0] }
 0x17e   : > { %v1693_v54 = vsel %vm5861_vm3, %v1688_v45, %v1692_v19  ;;  %v3135_v26 = vor.u32 %v3597_v50, %v3134_v15  ;;  %v3175_v59 = vor.u32 %v3602_v55, %v3172_v38  ;;  %v3162_v5 = vld [vmem:[#allocation3 + $0x58] sm:$0xf]  ;;  %v3605_v48 = vld [vmem:[#allocation3 + $0x78] sm:$0xf0]  ;;  %v3610_v7 = vld [vmem:[#allocation3 + $0xa4] sm:$0xf] }
 0x17f   : > { %2725 = vmatmul.bf16.vlgmr.msra.gmra.mxu0 %v3139_v61  ;;  %1709 = vst [vmem:[#allocation3 + $0x11c] sm:$0xf] %v1693_v54  ;;  %v3163_v8 = vor.u32 %v3605_v48, %v3162_v5  ;;  %v3200_v41 = vld [vmem:[#allocation3 + $0xc4] sm:$0xf0]  ;;  %v3170_v40 = vld [vmem:[#allocation3 + $0x60] sm:$0xf] }
 0x180   : > { %v3606_v4 = vld [vmem:[#allocation3 + $0x80] sm:$0xf0]  ;;  %v3203_v13 = vor.u32 %v3610_v7, %v3200_v41  ;;  %v3611_v37 = vld [vmem:[#allocation3 + $0xac] sm:$0xf]  ;;  %v3208_v51 = vld [vmem:[#allocation3 + $0xcc] sm:$0xf0] }
 0x181   : > { %2751 = vmatpush.bf16.msrb.mxu0 %v3692_v3  ;;  %3763 = vmatpush.bf16.msra.mxu1 %v3692_v3  ;;  %v3171_v17 = vor.u32 %v3606_v4, %v3170_v40  ;;  %v3690_v49 = vld [vmem:[#allocation9 + $0x200] sm:$0xff]  ;;  %v3211_v24 = vor.u32 %v3611_v37, %v3208_v51  ;;  %v3619_v53 = vld [vmem:[#allocation3 + $0xec] sm:$0xf]  ;;  %v3236_v11 = vld [vmem:[#allocation3 + $0x10c] sm:$0xf0] }
 0x182   : > { %v3198_v57 = vld [vmem:[#allocation3 + $0xa0] sm:$0xf]  ;;  %v3614_v62 = vld [vmem:[#allocation3 + $0xc0] sm:$0xf0]  ;;  %v3206_v36 = vld [vmem:[#allocation3 + $0xa8] sm:$0xf]  ;;  %v3239_v56 = vor.u32 %v3619_v53, %v3236_v11 }
 0x183   : > { %2638 = vmatmul.bf16.vlgmr.msrb.gmra.mxu1 %v3127_v16  ;;  %v3199_v12 = vor.u32 %v3614_v62, %v3198_v57  ;;  %v3615_v43 = vld [vmem:[#allocation3 + $0xc8] sm:$0xf0]  ;;  %v3620_v20 = vld [vmem:[#allocation3 + $0xf4] sm:$0xf]  ;;  %v3244_v28 = vld [vmem:[#allocation3 + $0x114] sm:$0xf0] }
 0x184   : > { %v3207_v52 = vor.u32 %v3615_v43, %v3206_v36  ;;  %v3247_v60 = vor.u32 %v3620_v20, %v3244_v28  ;;  %v3234_v29 = vld [vmem:[#allocation3 + $0xe8] sm:$0xf]  ;;  %v3623_v23 = vld [vmem:[#allocation3 + $0x108] sm:$0xf0]  ;;  %v3242_v18 = vld [vmem:[#allocation3 + $0xf0] sm:$0xf] }
 0x185   : > { %2752 = vmatpush.bf16.msrb.mxu0 %v3691_v46  ;;  %3764 = vmatpush.bf16.msra.mxu1 %v3691_v46  ;;  %v3235_v30 = vor.u32 %v3623_v23, %v3234_v29  ;;  %v3624_v58 = vld [vmem:[#allocation3 + $0x110] sm:$0xf0]  ;;  %v3598_v63 = vld [vmem:[#allocation3 + $0x40] sm:$0xf0]  ;;  %v3142_v6 = vld [vmem:[#allocation3 + $0x20] sm:$0xf] }
 0x186   : > { %v3243_v34 = vor.u32 %v3624_v58, %v3242_v18  ;;  %v5544_v44 = vld [vmem:[%s5631_s4] ss:$0 sm:$0xff]  ;;  %v3143_v33 = vor.u32 %v3598_v63, %v3142_v6  ;;  %v3178_v21 = vld [vmem:[#allocation3 + $0x68] sm:$0xf]  ;;  %v3607_v1 = vld [vmem:[#allocation3 + $0x88] sm:$0xf0] }
 0x187   : > { %v3179_v2 = vor.u32 %v3607_v1, %v3178_v21  ;;  %v3214_v27 = vld [vmem:[#allocation3 + $0xb0] sm:$0xf]  ;;  %v3616_v47 = vld [vmem:[#allocation3 + $0xd0] sm:$0xf0]  ;;  %v3250_v4 = vld [vmem:[#allocation3 + $0xf8] sm:$0xf] }
 0x188   : > { %v3215_v15 = vor.u32 %v3616_v47, %v3214_v27 }
 0x189   : > { %2753 = vmatpush.bf16.msrb.mxu0 %v3690_v49  ;;  %3765 = vmatpush.bf16.msra.mxu1 %v3690_v49 }
 0x18a   : > { %2672 = vmatmul.bf16.gmra.mxu2 %v3167_v9  ;;  %2696 = vmatmul.bf16.vlgmr.msra.gmra.mxu3 %v3135_v26 }
 0x18f   : > { %2730 = vmatmul.bf16.gmra.mxu0 %v3175_v59 }
 0x193   : > { %2643 = vmatmul.bf16.gmra.mxu1 %v3163_v8 }
 0x197   : > { %v2552_v14 = vpop.f32.mrf.mxu2 }
 0x19a   : > { %2677 = vmatmul.bf16.gmra.mxu2 %v3203_v13  ;;  %2701 = vmatmul.bf16.gmra.mxu3 %v3171_v17  ;;  %v3625_v13 = vld [vmem:[#allocation3 + $0x118] sm:$0xf0] }
 0x19b   : > { %v3251_v49 = vor.u32 %v3625_v13, %v3250_v4  ;;  %v3699_v4 = vld [vmem:[#allocation10 + $0x8] sm:$0xff] }
 0x19f   : > { %2735 = vmatmul.bf16.gmra.mxu0 %v3211_v24  ;;  %v2554_v39 = vpop.f32.mrf.mxu2 }
 0x1a3   : > { %2648 = vmatmul.bf16.gmra.mxu1 %v3199_v12 }
 0x1aa   : > { %2682 = vmatmul.bf16.gmra.mxu2 %v3239_v56  ;;  %2706 = vmatmul.bf16.gmra.mxu3 %v3207_v52 }
 0x1af   : > { %2740 = vmatmul.bf16.gmra.mxu0 %v3247_v60  ;;  %v3705_v60 = vld [vmem:[#allocation10 + $0x38] sm:$0xff] }
 0x1b0   : > { %2855 = vmatpush.bf16.msra.mxu2 %v3705_v60  ;;  %3766 = vmatpush.bf16.msrb.mxu3 %v3705_v60 }
 0x1b3   : > { %2653 = vmatmul.bf16.gmra.mxu1 %v3235_v30 }
 0x1b7   : > { %v2610_v10 = vpop.f32.mrf.mxu0 }
 0x1ba   : > { %2711 = vmatmul.bf16.gmra.mxu3 %v3243_v34 }
 0x1bb   : > { %v2523_v42 = vpop.f32.mrf.mxu1 }
 0x1bc   : > { %v2524_v31 = vadd.f32 %v5544_v44, %v2523_v42 }
 0x1be   : > { %v2553_v0 = vadd.f32 %v2552_v14, %v2524_v31 }
 0x1bf   : > { %2754 = vmatmul.bf16.vlgmr.msrb.gmra.mxu0 %v3143_v33  ;;  %v2612_v19 = vpop.f32.mrf.mxu0 }
 0x1c3   : > { %2759 = vmatmul.bf16.vlgmr.msra.gmra.mxu1 %v3179_v2  ;;  %v2525_v25 = vpop.f32.mrf.mxu1  ;;  %v3703_v2 = vld [vmem:[#allocation10 + $0x28] sm:$0xff] }
 0x1c4   : > { %v2526_v45 = vadd.f32 %v5544_v44, %v2525_v25 }
 0x1c6   : > { %v2555_v61 = vadd.f32 %v2554_v39, %v2526_v45 }
 0x1c9   : > { %v2557_v32 = vpop.f32.mrf.mxu2  ;;  %v2581_v54 = vpop.f32.mrf.mxu3 }
 0x1ca   : > { %v2615_v22 = vpop.f32.mrf.mxu0  ;;  %v2582_v16 = vadd.f32 %v2581_v54, %v2553_v0 }
 0x1cc   : > { %v2528_v35 = vpop.f32.mrf.mxu1  ;;  %v5549_v59 = vadd.f32 %v2610_v10, %v2582_v16  ;;  %v3704_v10 = vld [vmem:[#allocation10 + $0x30] sm:$0xff] }
 0x1cd   : > { %v2529_v50 = vadd.f32 %v5544_v44, %v2528_v35  ;;  %2856 = vmatpush.bf16.msra.mxu2 %v3704_v10  ;;  %3767 = vmatpush.bf16.msrb.mxu3 %v3704_v10 }
 0x1cf   : > { %v2558_v9 = vadd.f32 %v2557_v32, %v2529_v50  ;;  %v3702_v32 = vld [vmem:[#allocation10 + $0x20] sm:$0xff] }
 0x1d1   : > { %v2559_v26 = vpop.f32.mrf.mxu2  ;;  %v2583_v38 = vpop.f32.mrf.mxu3  ;;  %2857 = vmatpush.bf16.msra.mxu2 %v3703_v2  ;;  %3768 = vmatpush.bf16.msrb.mxu3 %v3703_v2 }
 0x1d2   : > { %v2617_v55 = vpop.f32.mrf.mxu0  ;;  %v2584_v3 = vadd.f32 %v2583_v38, %v2555_v61 }
 0x1d3   : > { %2764 = vmatmul.bf16.gmra.mxu1 %v3215_v15 }
 0x1d4   : > { %v2530_v5 = vpop.f32.mrf.mxu1  ;;  %v5552_v17 = vadd.f32 %v2612_v19, %v2584_v3 }
 0x1d5   : > { %v2531_v48 = vadd.f32 %v5544_v44, %v2530_v5  ;;  %2858 = vmatpush.bf16.msra.mxu2 %v3702_v32  ;;  %3769 = vmatpush.bf16.msrb.mxu3 %v3702_v32 }
 0x1d7   : > { %v2560_v8 = vadd.f32 %v2559_v26, %v2531_v48  ;;  %v3700_v48 = vld [vmem:[#allocation10 + $0x10] sm:$0xff] }
 0x1d9   : > { %v2562_v46 = vpop.f32.mrf.mxu2 }
 0x1da   : > { %v2620_v7 = vpop.f32.mrf.mxu0  ;;  %v2586_v41 = vpop.f32.mrf.mxu3 }
 0x1db   : > { %v2587_v40 = vadd.f32 %v2586_v41, %v2558_v9  ;;  %v3701_v9 = vld [vmem:[#allocation10 + $0x18] sm:$0xff] }
 0x1dc   : > { %2859 = vmatpush.bf16.msra.mxu2 %v3701_v9  ;;  %3770 = vmatpush.bf16.msrb.mxu3 %v3701_v9 }
 0x1dd   : > { %v2616_v11 = vadd.f32 %v2615_v22, %v2587_v40 }
 0x1e0   : > { %v2533_v37 = vpop.f32.mrf.mxu1  ;;  %2860 = vmatpush.bf16.msra.mxu2 %v3700_v48  ;;  %3771 = vmatpush.bf16.msrb.mxu3 %v3700_v48 }
 0x1e1   : > { %v2534_v51 = vadd.f32 %v5544_v44, %v2533_v37  ;;  %v2564_v12 = vpop.f32.mrf.mxu2 }
 0x1e2   : > { %v2622_v57 = vpop.f32.mrf.mxu0  ;;  %v2588_v62 = vpop.f32.mrf.mxu3 }
 0x1e3   : > { %2769 = vmatmul.bf16.gmra.mxu1 %v3251_v49  ;;  %v2563_v24 = vadd.f32 %v2562_v46, %v2534_v51  ;;  %v2589_v53 = vadd.f32 %v2588_v62, %v2560_v8 }
 0x1e4   : > { %2861 = vmatpush.bf16.msra.mxu2 %v3699_v4  ;;  %3772 = vmatpush.bf16.msrb.mxu3 %v3699_v4 }
 0x1e5   : > { %v5556_v29 = vadd.f32 %v2617_v55, %v2589_v53 }
 0x1e8   : > { %v2535_v36 = vpop.f32.mrf.mxu1 }
 0x1e9   : > { %v2536_v43 = vadd.f32 %v5544_v44, %v2535_v36  ;;  %v2567_v23 = vpop.f32.mrf.mxu2 }
 0x1eb   : > { %v2565_v56 = vadd.f32 %v2564_v12, %v2536_v43  ;;  %v3698_v12 = vld [vmem:[#allocation10] sm:$0xff] }
 0x1ec   : > { %v2625_v52 = vpop.f32.mrf.mxu0  ;;  %2862 = vmatpush.bf16.msra.mxu2 %v3698_v12  ;;  %3773 = vmatpush.bf16.msrb.mxu3 %v3698_v12 }
 0x1ed   : > { %v2591_v20 = vpop.f32.mrf.mxu3 }
 0x1ee   : > { %v2592_v28 = vadd.f32 %v2591_v20, %v2563_v24 }
 0x1f0   : > { %v2538_v30 = vpop.f32.mrf.mxu1  ;;  %v2621_v6 = vadd.f32 %v2620_v7, %v2592_v28 }
 0x1f1   : > { %v2539_v18 = vadd.f32 %v5544_v44, %v2538_v30  ;;  %v2569_v21 = vpop.f32.mrf.mxu2 }
 0x1f3   : > { %v2568_v58 = vadd.f32 %v2567_v23, %v2539_v18 }
 0x1f4   : > { %v2627_v34 = vpop.f32.mrf.mxu0 }
 0x1f5   : > { %v2593_v14 = vpop.f32.mrf.mxu3 }
 0x1f6   : > { %v2594_v63 = vadd.f32 %v2593_v14, %v2565_v56 }
 0x1f8   : > { %v2540_v33 = vpop.f32.mrf.mxu1  ;;  %v5559_v39 = vadd.f32 %v2622_v57, %v2594_v63 }
 0x1f9   : > { %v2541_v25 = vadd.f32 %v5544_v44, %v2540_v33 }
 0x1fb   : > { %v2570_v54 = vadd.f32 %v2569_v21, %v2541_v25 }
 0x1fc   : > { %v2726_v1 = vpop.f32.mrf.mxu0 }
 0x1fd   : > { %v2596_v42 = vpop.f32.mrf.mxu3  ;;  %v2668_v19 = vpop.f32.mrf.mxu2 }
 0x1fe   : > { %v2597_v31 = vadd.f32 %v2596_v42, %v2568_v58 }
 0x200   : > { %v2639_v0 = vpop.f32.mrf.mxu1  ;;  %v5564_v22 = vadd.f32 %v2625_v52, %v2597_v31 }
 0x201   : > { %v2640_v47 = vadd.f32 %v2639_v0, %v5549_v59 }
 0x203   : > { %v2669_v44 = vadd.f32 %v2668_v19, %v2640_v47 }
 0x204   : > { %v5562_v45 = vpop.f32.mrf.mxu0 }
 0x205   : > { %v2598_v61 = vpop.f32.mrf.mxu3  ;;  %v2670_v50 = vpop.f32.mrf.mxu2 }
 0x206   : > { %v2599_v27 = vadd.f32 %v2598_v61, %v2570_v54 }
 0x208   : > { %v2641_v16 = vpop.f32.mrf.mxu1  ;;  %v5567_v26 = vadd.f32 %v2627_v34, %v2599_v27 }
 0x209   : > { %v2642_v18 = vadd.f32 %v2641_v16, %v5552_v17 }
 0x20b   : > { %v2671_v34 = vadd.f32 %v2670_v50, %v2642_v18 }
 0x20c   : > { %v2731_v35 = vpop.f32.mrf.mxu0 }
 0x20d   : > { %v2697_v15 = vpop.f32.mrf.mxu3  ;;  %v2673_v46 = vpop.f32.mrf.mxu2 }
 0x20e   : > { %v2698_v38 = vadd.f32 %v2697_v15, %v2669_v44 }
 0x210   : > { %v2644_v55 = vpop.f32.mrf.mxu1  ;;  %v2727_v8 = vadd.f32 %v2726_v1, %v2698_v38 }
 0x211   : > { %v2645_v59 = vadd.f32 %v2644_v55, %v2616_v11 }
 0x213   : > { %v2674_v13 = vadd.f32 %v2673_v46, %v2645_v59 }
 0x214   : > { %v2733_v3 = vpop.f32.mrf.mxu0 }
 0x215   : > { %v2699_v5 = vpop.f32.mrf.mxu3  ;;  %v2675_v51 = vpop.f32.mrf.mxu2 }
 0x216   : > { %v2700_v63 = vadd.f32 %v2699_v5, %v2671_v34 }
 0x218   : > { %v2646_v7 = vpop.f32.mrf.mxu1  ;;  %v2729_v1 = vadd.f32 %v5562_v45, %v2700_v63 }
 0x219   : > { %v2647_v14 = vadd.f32 %v2646_v7, %v5556_v29 }
 0x21c   : > { %v2736_v41 = vpop.f32.mrf.mxu0 }
 0x21d   : > { %v2702_v40 = vpop.f32.mrf.mxu3  ;;  %v2678_v43 = vpop.f32.mrf.mxu2 }
 0x21e   : > { %v2703_v49 = vadd.f32 %v2702_v40, %v2674_v13 }
 0x220   : > { %v2649_v37 = vpop.f32.mrf.mxu1  ;;  %v2732_v62 = vadd.f32 %v2731_v35, %v2703_v49 }
 0x221   : > { %v2650_v53 = vadd.f32 %v2649_v37, %v2621_v6  ;;  %v2676_v6 = vadd.f32 %v2675_v51, %v2647_v14 }
 0x223   : > { %v2679_v56 = vadd.f32 %v2678_v43, %v2650_v53  ;;  %v3858_v43 = vld [vmem:[%s5633_s6] ss:$0 sm:$0xff] }
 0x224   : > { %v2738_v24 = vpop.f32.mrf.mxu0 }
 0x225   : > { %v2704_v57 = vpop.f32.mrf.mxu3  ;;  %v2680_v54 = vpop.f32.mrf.mxu2 }
 0x226   : > { %v2705_v33 = vadd.f32 %v2704_v57, %v2676_v6 }
 0x228   : > { %v2651_v36 = vpop.f32.mrf.mxu1  ;;  %v2734_v25 = vadd.f32 %v2733_v3, %v2705_v33 }
 0x229   : > { %v2652_v47 = vadd.f32 %v2651_v36, %v5559_v39 }
 0x22b   : > { %v2681_v15 = vadd.f32 %v2680_v54, %v2652_v47 }
 0x22c   : > { %v2741_v11 = vpop.f32.mrf.mxu0 }
 0x22d   : > { %v2707_v52 = vpop.f32.mrf.mxu3  ;;  %v2683_v9 = vpop.f32.mrf.mxu2 }
 0x22e   : > { %v2708_v20 = vadd.f32 %v2707_v52, %v2679_v56 }
 0x230   : > { %v2654_v28 = vpop.f32.mrf.mxu1  ;;  %v2737_v60 = vadd.f32 %v2736_v41, %v2708_v20 }
 0x231   : > { %v2655_v48 = vadd.f32 %v2654_v28, %v5564_v22 }
 0x233   : > { %v2684_v39 = vadd.f32 %v2683_v9, %v2655_v48 }
 0x234   : > { %v2743_v23 = vpop.f32.mrf.mxu0 }
 0x235   : > { %v2709_v29 = vpop.f32.mrf.mxu3  ;;  %v2685_v41 = vpop.f32.mrf.mxu2 }
 0x236   : > { %v2710_v45 = vadd.f32 %v2709_v29, %v2681_v15 }
 0x238   : > { %v2656_v30 = vpop.f32.mrf.mxu1  ;;  %v2739_v38 = vadd.f32 %v2738_v24, %v2710_v45 }
 0x239   : > { %v2657_v7 = vadd.f32 %v2656_v30, %v5567_v26  ;;  %v3728_v26 = vld [vmem:[%s4228_s23] sm:$0xff]  }
 0x23a   : > { %v3729_v56 = vunpack.c.l.bf16 %v3728_v26 }
 0x23b   : > { %v2686_v37 = vadd.f32 %v2685_v41, %v2657_v7 }
 0x23c   : > { %v2755_v58 = vpop.f32.mrf.mxu0 }
 0x23d   : > { %v2756_v21 = vadd.f32 %v2755_v58, %v2727_v8  ;;  %v2712_v44 = vpop.f32.mrf.mxu3  ;;  %v3747_v58 = vld [vmem:[%s4228_s23 + $0x8] sm:$0xff]  }
 0x23e   : > { %v2713_v13 = vadd.f32 %v2712_v44, %v2684_v39  ;;  %v3733_v14 = vunpack.c.l.bf16 %v3747_v58 }
 0x23f   : > { %v2775_v2 = vmax.f32 %v2756_v21, 0.0  ;;  %v3734_v21 = vunpack.c.h.bf16 %v3747_v58 }
 0x240   : > { %v2760_v10 = vpop.f32.mrf.mxu1  ;;  %v2742_v49 = vadd.f32 %v2741_v11, %v2713_v13 }
 0x241   : > { %v2761_v0 = vadd.f32 %v2760_v10, %v2732_v62 }
 0x243   : > { %v2777_v16 = vmax.f32 %v2761_v0, 0.0 }
 0x244   : > { %v2757_v42 = vpop.f32.mrf.mxu0 }
 0x245   : > { %v2758_v31 = vadd.f32 %v2757_v42, %v2729_v1  ;;  %v2714_v40 = vpop.f32.mrf.mxu3 }
 0x246   : > { %v2715_v51 = vadd.f32 %v2714_v40, %v2686_v37 }
 0x247   : > { %v2776_v19 = vmax.f32 %v2758_v31, 0.0 }
 0x248   : > { %v2762_v61 = vpop.f32.mrf.mxu1  ;;  %v2744_v57 = vadd.f32 %v2743_v23, %v2715_v51 }
 0x249   : > { %v2783_v32 = vpack.c.bf16 %v2776_v19, %v2775_v2  ;;  %v2763_v17 = vadd.f32 %v2762_v61, %v2734_v25  ;;  %v3748_v2 = vld [vmem:[%s4228_s23 + $0x10] sm:$0xff]   ;;  %v3749_v61 = vld [vmem:[%s4228_s23 + $0x18] sm:$0xff]   ;;  %s2939_s23 = sshll.u32 %s2936_s20, 4  ;;  %s2940_s23 = int_to_ptr.hbm [resolvable:$true] %s2939_s23 }
 0x24a   : > { %v3737_v19 = vunpack.c.l.bf16 %v3748_v2  ;;  %v3741_v54 = vunpack.c.l.bf16 %v3749_v61  ;;  %v3742_v44 = vunpack.c.h.bf16 %v3749_v61  ;;  %s3993_s30 = sshra.s32 %s2940_s23, 4  ;;  %s3994_s30 = int_to_ptr.hbm [resolvable:$true] %s3993_s30 }
 0x24b   : > { %v2778_v27 = vmax.f32 %v2763_v17, 0.0  ;;  %2863 = vmatmul.bf16.vlgmr.msra.gmra.mxu2 %v2783_v32  ;;  %s3995_s12 = scalar_lea.hbm %s3994_s30, 64  ;;  %p4000_p11 = scmp.lt.s32.totalorder %s3994_s30, %s5634_s7 }
 0x24c   : > { %p3996_p1 = scmp.ne.s32.totalorder %s3994_s30, %s3995_s12  ;;  %p4001_p9 = scmp.lt.s32.totalorder %s3999_s14, %s3995_s12 }
 0x24d   : > { %v2784_v35 = vpack.c.bf16 %v2778_v27, %v2777_v16 }
 0x24e   : > { %p3997_p4 = pnand %p3996_p1, %p4194_p3  ;;  %p4002_p2 = por %p4001_p9, %p4000_p11 }
 0x250   : > { %v2765_v50 = vpop.f32.mrf.mxu1  ;;  %p3998_p8 = pneg %p3997_p4 }
 0x251   : > { %v2766_v55 = vadd.f32 %v2765_v50, %v2737_v60  ;;  %v3730_v60 = vunpack.c.h.bf16 %v3728_v26 }
 0x252   : > { %p4003_p10 = pnand %p4002_p2, %p3998_p8 }
 0x253   : > { %v2779_v8 = vmax.f32 %v2766_v55, 0.0 }
 0x258   : > { %v2767_v5 = vpop.f32.mrf.mxu1 }
 0x259   : > { %v2768_v3 = vadd.f32 %v2767_v5, %v2739_v38 }
 0x25b   : > { %v2780_v46 = vmax.f32 %v2768_v3, 0.0  ;;  %2868 = vmatmul.bf16.gmra.mxu2 %v2784_v35  ;;  %v3738_v35 = vunpack.c.h.bf16 %v3748_v2 }
 0x25d   : > { %v2785_v59 = vpack.c.bf16 %v2780_v46, %v2779_v8 }
 0x260   : > { %v2770_v4 = vpop.f32.mrf.mxu1 }
 0x261   : > { %v2771_v24 = vadd.f32 %v2770_v4, %v2742_v49 }
 0x263   : > { %v2781_v12 = vmax.f32 %v2771_v24, 0.0 }
 0x268   : > { %v2772_v62 = vpop.f32.mrf.mxu1 }
 0x269   : > { %v2773_v22 = vadd.f32 %v2772_v62, %v2744_v57 }
 0x26b   : > { %v2782_v53 = vmax.f32 %v2773_v22, 0.0  ;;  %2873 = vmatmul.bf16.gmra.mxu2 %v2785_v59 }
 0x26d   : > { %v2786_v36 = vpack.c.bf16 %v2782_v53, %v2781_v12 }
 0x26f   : > { %2878 = vmatmul.bf16.vlgmr.msrb.gmra.mxu3 %v2786_v36 }
 0x2ce   : > { %v2864_v52 = vpop.f32.mrf.mxu2 }
 0x2cf   : > { %v2865_v20 = vadd.f32 %v3858_v43, %v2864_v52 }
 0x2d1   : > { %v2900_v11 = vadd.f32 %v3729_v56, %v2865_v20 }
 0x2d3   : > { %v2908_v28 = vmax.f32 %v2900_v11, 0.0 }
 0x2d5   : > { %2916 = vst [vmem:[%s5580_s29] sm:$0xff] %v2908_v28 }
 0x2d6   : > { %v2866_v23 = vpop.f32.mrf.mxu2 }
 0x2d7   : > { %v2867_v30 = vadd.f32 %v3858_v43, %v2866_v23 }
 0x2d9   : > { %v2901_v18 = vadd.f32 %v3730_v60, %v2867_v30 }
 0x2db   : > { %v2909_v34 = vmax.f32 %v2901_v18, 0.0 }
 0x2dd   : > { %2917 = vst [vmem:[%s5580_s29 + $0x8] sm:$0xff] %v2909_v34 }
 0x2de   : > { %v2869_v63 = vpop.f32.mrf.mxu2 }
 0x2df   : > { %v2870_v10 = vadd.f32 %v3858_v43, %v2869_v63 }
 0x2e1   : > { %v2902_v6 = vadd.f32 %v3733_v14, %v2870_v10 }
 0x2e3   : > { %v2910_v33 = vmax.f32 %v2902_v6, 0.0 }
 0x2e5   : > { %2918 = vst [vmem:[%s5580_s29 + $0x10] sm:$0xff] %v2910_v33 }
 0x2e6   : > { %v2871_v1 = vpop.f32.mrf.mxu2 }
 0x2e7   : > { %v2872_v42 = vadd.f32 %v3858_v43, %v2871_v1 }
 0x2e9   : > { %v2903_v31 = vadd.f32 %v3734_v21, %v2872_v42 }
 0x2eb   : > { %v2911_v0 = vmax.f32 %v2903_v31, 0.0 }
 0x2ed   : > { %2919 = vst [vmem:[%s5580_s29 + $0x18] sm:$0xff] %v2911_v0 }
 0x2ee   : > { %v2874_v25 = vpop.f32.mrf.mxu2 }
 0x2ef   : > { %v2875_v32 = vadd.f32 %v3858_v43, %v2874_v25 }
 0x2f1   : > { %v2904_v17 = vadd.f32 %v3737_v19, %v2875_v32 }
 0x2f2   : > { %v2879_v16 = vpop.f32.mrf.mxu3 }
 0x2f3   : > { %v2912_v27 = vmax.f32 %v2904_v17, 0.0  ;;  %v2880_v29 = vadd.f32 %v3858_v43, %v2879_v16 }
 0x2f5   : > { %2920 = vst [vmem:[%s5580_s29 + $0x20] sm:$0xff] %v2912_v27  ;;  %v2906_v47 = vadd.f32 %v3741_v54, %v2880_v29 }
 0x2f6   : > { %v2876_v50 = vpop.f32.mrf.mxu2 }
 0x2f7   : > { %v2914_v15 = vmax.f32 %v2906_v47, 0.0  ;;  %v2877_v45 = vadd.f32 %v3858_v43, %v2876_v50 }
 0x2f9   : > { %2922 = vst [vmem:[%s5580_s29 + $0x30] sm:$0xff] %v2914_v15  ;;  %v2905_v9 = vadd.f32 %v3738_v35, %v2877_v45 }
 0x2fa   : > { %v2881_v55 = vpop.f32.mrf.mxu3 }
 0x2fb   : > { %v2913_v38 = vmax.f32 %v2905_v9, 0.0  ;;  %v2882_v5 = vadd.f32 %v3858_v43, %v2881_v55 }
 0x2fd   : > { %2921 = vst [vmem:[%s5580_s29 + $0x28] sm:$0xff] %v2913_v38  ;;  %v2907_v3 = vadd.f32 %v3742_v44, %v2882_v5 }
 0x2ff   : > { %v2915_v48 = vmax.f32 %v2907_v3, 0.0 }
 0x301   : > { %2923 = vst [vmem:[%s5580_s29 + $0x38] sm:$0xff] %v2915_v48 }
 0x302   : > { %4006 = shalt.err (!%p4003_p10)
}
 0x303   : > { %s4061_s15 = smov 128   ;;  %s4062_s29 = smov 8  }
 0x304   : > { %3788 = dma.vmem_to_hbm [thread:$0]  (%p4194_p3), %s2938_s1, 1024, %s2940_s23, %s2925_s28, %s4061_s15, %s4061_s15, %s4062_s29  }
 0x305 PF: > { %s2954_s9 = sand.u32 1, %s4041_s24   ;;  %p5916_p12 = scmp.ge.s32.totalorder %s4053_s27, 2 }
 0x306   : > { %s2955_s21 = scalar_lea.sflag [#allocation6], %s2954_s9 }
 0x307   : > { %p3805_p13 = pnand %p5916_p12, %p4138_p6 }
 0x309   : > { %p3806_p0 = pneg %p3805_p13 }
 0x30b   : > { %4036 = dma.done.wait (%p3806_p0), %s2955_s21, 1024  }
 0x30c   : > { %4038 = vsyncadd (%p3806_p0), %s2955_s21, 4294966272  ;;  %p22_p5 = scmp.ge.s32.totalorder %s4176_s13, 4   ;;  %s5917_s24 = smov %s4045_s25 }
 0x30d   : > { %s5918_s25 = smov %s4049_s26  ;;  %s5919_s26 = smov %s4190_s17 }
 0x30e   : > { %s5920_s27 = smov %s4176_s13  ;;  %24 = sbr.rel (!%p22_p5) target bundleno = 9 (0x9), region = 105 }
 0x313   :  { %2961 = vsyncpa [#allocation5], 1 }
 0x314   :  { %2963 = vsyncpa [#allocation5 + $0x1], 1 }
 0x315   :  { %2964 = vsyncpa [#allocation8], 1 }
 0x316   :  { %2965 = vsyncpa [#allocation11], 1 }
 0x317   :  { %2966 = vsyncpa [#allocation6], 1 }
 0x318   :  { %2968 = vsyncpa [#allocation6 + $0x1], 1 }

</bundles_post_ra>
